<compile_context>
chip_gen: v7x
topology: tpu7x:2x2x1
jax: 0.10.0
libtpu: 0.0.40
codegen_flags: <defaults>
</compile_context>

<pallas_src>
import functools

import jax
import jax.numpy as jnp
import numpy as np
from jax import lax
from jax.experimental import pallas as pl
from jax.experimental.pallas import tpu as pltpu


# ----------------------------------------------------------------------------
# Fused kernel: one batch element per grid step.
# ----------------------------------------------------------------------------
def _lane_exist_kernel(x_ref, w1_ref, shift_ref, w2_ref, b2_ref, masks_ref,
                       lw1_ref, lb1_ref, lw2_ref, lb2_ref, o_ref,
                       ypad_ref, ppad_ref, *,
                       H, W, C_mid, C_out, dil, hidden, lpad, halo):
    S = H * W
    TC = 9 * C_mid

    # --- dilated 3x3 conv (512 -> 32, no bias; BN scale folded into weights)
    #     as ONE tap-stacked MXU matmul ---------------------------------------
    x = x_ref[0].astype(jnp.bfloat16)                       # (C_in, S)
    y = jnp.dot(w1_ref[...], x,
                preferred_element_type=jnp.float32)         # (9*C_mid, S) f32

    # Zero-halo scratch: only the two halo bands actually read by the tap
    # shifts are re-zeroed each step; the data region is overwritten below.
    ypad_ref[:, lpad - halo:lpad] = jnp.zeros((TC, halo), jnp.float32)
    ypad_ref[:, lpad + S:lpad + S + halo] = jnp.zeros((TC, halo), jnp.float32)
    ypad_ref[:, lpad:lpad + S] = y                          # lane-aligned store

    # Precomputed border masks for the horizontal taps (resident tiny tile).
    mask_l = masks_ref[0:1, :]                              # 1 where (w - dil) valid
    mask_r = masks_ref[1:2, :]                              # 1 where (w + dil) valid

    # Sum the 9 shifted tap bands (shifts = static lane slices of the scratch).
    acc = ypad_ref[4 * C_mid:5 * C_mid, lpad:lpad + S]      # centre tap (no shift)
    for kh in range(3):
        for kw in range(3):
            t = kh * 3 + kw
            if t == 4:
                continue
            off = (kh - 1) * dil * W + (kw - 1) * dil
            band = ypad_ref[t * C_mid:(t + 1) * C_mid,
                            lpad + off:lpad + off + S]      # (C_mid, S)
            if kw == 0:
                band = band * mask_l
            elif kw == 2:
                band = band * mask_r
            acc = acc + band

    # --- BatchNorm2d (eval; scale already folded into conv weights) + ReLU ---
    yb = jnp.maximum(acc + shift_ref[...], 0.0)             # (C_mid, S)
    # TODO(synk): Dropout2d(0.1) is identity in eval mode; training-mode
    # channel dropout is not implemented here.

    # --- 1x1 conv (32 -> 5) with bias, channel-major -------------------------
    z = jnp.dot(w2_ref[...], yb, preferred_element_type=jnp.float32)
    z = z + b2_ref[...]                                     # (C_out, S)

    # --- softmax over channels (sublane dim) ---------------------------------
    z = z - jnp.max(z, axis=0, keepdims=True)
    e = jnp.exp(z)
    p = e / jnp.sum(e, axis=0, keepdims=True)               # (C_out, S)

    # --- MaxPool2d(2, 2): max of 4 shifted views.  Only even-(h,w) lanes are
    #     meaningful; their selection + NCHW flatten order is folded into the
    #     zero-row-expanded linear1 weight, so no compaction is needed. -------
    ppad_ref[:, S:S + W + 1] = jnp.zeros((C_out, W + 1), jnp.float32)
    ppad_ref[:, :S] = p
    m = jnp.maximum(
        jnp.maximum(p, ppad_ref[:, 1:1 + S]),
        jnp.maximum(ppad_ref[:, W:W + S], ppad_ref[:, W + 1:W + 1 + S]))

    # --- Linear(Channel, 128): one matmul + block-diagonal extraction --------
    P = jnp.dot(m, lw1_ref[...],
                preferred_element_type=jnp.float32)          # (C_out, C_out*hidden)
    h1 = lb1_ref[...]                                        # (1, hidden)
    for c in range(C_out):
        h1 = h1 + P[c:c + 1, c * hidden:(c + 1) * hidden]
    h1 = jnp.maximum(h1, 0.0)

    # --- Linear(128, num_output) + sigmoid ------------------------------------
    o = jnp.dot(h1, lw2_ref[...], preferred_element_type=jnp.float32)
    o = o + lb2_ref[...]
    o_ref[0] = (1.0 / (1.0 + jnp.exp(-o))).astype(o_ref.dtype)


# ----------------------------------------------------------------------------
# Wrapper
# ----------------------------------------------------------------------------
def lane_exist_forward(x_nchw, params, *, num_output):
    B, C_in, H, W = x_nchw.shape
    C_mid = params["w1"].shape[-1]
    C_out = params["w2"].shape[-1]
    hidden = params["lw1"].shape[-1]
    dil = 4                      # module: dilation == padding == 4
    assert H % 2 == 0 and W % 2 == 0, "maxpool(2,2) assumes even H, W"
    assert W > 2 * dil
    Hp, Wp = H // 2, W // 2
    S = H * W

    halo = dil * W + dil                         # max |tap shift| in lanes
    lpad = ((halo + 127) // 128) * 128           # lane-aligned left halo
    spad = lpad + S + halo                       # scratch lane width

    # NCHW -> (B, C, H*W): metadata-only reshape, no HBM pass over the input.
    x2d = x_nchw.reshape(B, C_in, S)

    # Fold the BN (eval) per-output-channel scale into the bias-free conv weight,
    # then (3,3,C_in,C_mid) -> (9*C_mid, C_in) with taps stacked on rows; bf16 for MXU.
    w1_folded = params["w1"] * params["bn_scale"].reshape(1, 1, 1, C_mid)
    w1s = (w1_folded.transpose(0, 1, 3, 2)
           .reshape(9 * C_mid, C_in).astype(jnp.bfloat16))

    shift = params["bn_shift"].reshape(C_mid, 1).astype(jnp.float32)
    w2t = params["w2"].T                          # (C_out, C_mid)
    b2c = params["b2"].reshape(C_out, 1)

    # Precomputed horizontal-border masks for the left/right conv taps.
    w_idx = jnp.arange(S, dtype=jnp.int32) % W
    masks = jnp.stack([(w_idx >= dil).astype(jnp.float32),
                       (w_idx < W - dil).astype(jnp.float32)], axis=0)   # (2, S)

    # linear1 weight, re-indexed to (h*W + w, c*hidden + j) with ZERO rows at the
    # non-pooled (odd h or odd w) spatial positions: this folds both the 2x2-pool
    # compaction and PyTorch's NCHW view(-1, c*h*w) flatten order into the matmul.
    lw1 = params["lw1"]                           # (C_out*Hp*Wp, hidden)
    lw1_r = lw1.reshape(C_out, Hp, Wp, hidden)
    lw1_e = jnp.zeros((C_out, H, W, hidden), lw1.dtype)
    lw1_e = lw1_e.at[:, ::2, ::2, :].set(lw1_r)
    lw1_e = lw1_e.transpose(1, 2, 0, 3).reshape(S, C_out * hidden)

    lb1 = params["lb1"].reshape(1, hidden)
    lw2 = params["lw2"]                           # (hidden, num_output)
    lb2 = params["lb2"].reshape(1, num_output)

    kernel = functools.partial(
        _lane_exist_kernel, H=H, W=W, C_mid=C_mid, C_out=C_out,
        dil=dil, hidden=hidden, lpad=lpad, halo=halo)

    out = pl.pallas_call(
        kernel,
        out_shape=jax.ShapeDtypeStruct((B, 1, num_output), jnp.float32),
        grid=(B,),
        in_specs=[
            pl.BlockSpec((1, C_in, S), lambda b: (b, 0, 0)),
            pl.BlockSpec((9 * C_mid, C_in), lambda b: (0, 0)),
            pl.BlockSpec((C_mid, 1), lambda b: (0, 0)),
            pl.BlockSpec((C_out, C_mid), lambda b: (0, 0)),
            pl.BlockSpec((C_out, 1), lambda b: (0, 0)),
            pl.BlockSpec((2, S), lambda b: (0, 0)),
            pl.BlockSpec((S, C_out * hidden), lambda b: (0, 0)),
            pl.BlockSpec((1, hidden), lambda b: (0, 0)),
            pl.BlockSpec((hidden, num_output), lambda b: (0, 0)),
            pl.BlockSpec((1, num_output), lambda b: (0, 0)),
        ],
        out_specs=pl.BlockSpec((1, 1, num_output), lambda b: (b, 0, 0)),
        scratch_shapes=[
            pltpu.VMEM((9 * C_mid, spad), jnp.float32),   # tap-shift halo buffer
            pltpu.VMEM((C_out, S + W + 1), jnp.float32),  # pooling halo buffer
        ],
        compiler_params=pltpu.CompilerParams(
            # NOTE: with B == 1 in deployment on v7x, add a second parallel
            # (e.g. H-strip) grid axis so both TensorCores get work.
            dimension_semantics=("parallel",),
            vmem_limit_bytes=48 * 1024 * 1024,
        ),
    )(x2d, w1s, shift, w2t, b2c, masks, lw1_e, lb1, lw2, lb2)

    return out.reshape(B, num_output)


# ----------------------------------------------------------------------------
# Pure-JAX reference (correctness check)
# ----------------------------------------------------------------------------
def lane_exist_reference(x_nchw, params):
    hi = jax.lax.Precision.HIGHEST
    w_oihw = jnp.transpose(params["w1"], (3, 2, 0, 1))
    y = jax.lax.conv_general_dilated(
        x_nchw, w_oihw, window_strides=(1, 1), padding=((4, 4), (4, 4)),
        rhs_dilation=(4, 4), dimension_numbers=("NCHW", "OIHW", "NCHW"),
        precision=hi)
    scale = params["bn_scale"].reshape(1, -1, 1, 1)
    shift = params["bn_shift"].reshape(1, -1, 1, 1)
    y = jnp.maximum(y * scale + shift, 0.0)
    z = jnp.einsum("bchw,cd->bdhw", y, params["w2"], precision=hi)
    z = z + params["b2"].reshape(1, -1, 1, 1)
    z = jax.nn.softmax(z, axis=1)
    B, C, H, W = z.shape
    z = z.reshape(B, C, H // 2, 2, W // 2, 2).max(axis=(3, 5))
    f = z.reshape(B, -1)
    h = jnp.maximum(jnp.dot(f, params["lw1"], precision=hi) + params["lb1"], 0.0)
    o = jnp.dot(h, params["lw2"], precision=hi) + params["lb2"]
    return jax.nn.sigmoid(o)


# ----------------------------------------------------------------------------
if __name__ == "__main__":
    # Small shapes consistent with the module: NCHW input (B, 512, H, W);
    # Channel for linear1 = 5 * (H//2) * (W//2).
    B, C_in, H, W = 2, 512, 12, 12
    C_mid, C_out = 32, 5
    hidden, num_output = 128, 4
    Channel = C_out * (H // 2) * (W // 2)       # 180 (4500 for 60x60 inputs)
    eps = 0.001

    key = jax.random.PRNGKey(0)
    ks = jax.random.split(key, 12)

    x = jax.random.normal(ks[0], (B, C_in, H, W), jnp.float32)

    w1 = 0.02 * jax.random.normal(ks[1], (3, 3, C_in, C_mid), jnp.float32)
    gamma = 1.0 + 0.1 * jax.random.normal(ks[2], (C_mid,), jnp.float32)
    beta = 0.1 * jax.random.normal(ks[3], (C_mid,), jnp.float32)
    run_mean = 0.1 * jax.random.normal(ks[4], (C_mid,), jnp.float32)
    run_var = 0.5 + jnp.abs(jax.random.normal(ks[5], (C_mid,), jnp.float32))
    bn_scale = gamma / jnp.sqrt(run_var + eps)
    bn_shift = beta - run_mean * bn_scale
    w2 = 0.1 * jax.random.normal(ks[6], (C_mid, C_out), jnp.float32)
    b2 = 0.1 * jax.random.normal(ks[7], (C_out,), jnp.float32)
    lw1 = 0.05 * jax.random.normal(ks[8], (Channel, hidden), jnp.float32)
    lb1 = 0.05 * jax.random.normal(ks[9], (hidden,), jnp.float32)
    lw2 = 0.1 * jax.random.normal(ks[10], (hidden, num_output), jnp.float32)
    lb2 = 0.1 * jax.random.normal(ks[11], (num_output,), jnp.float32)

    params = dict(w1=w1, bn_scale=bn_scale, bn_shift=bn_shift, w2=w2, b2=b2,
                  lw1=lw1, lb1=lb1, lw2=lw2, lb2=lb2)

    out = lane_exist_forward(x, params, num_output=num_output)
    out = jax.block_until_ready(out)

    ref = lane_exist_reference(x, params)
    # Slightly looser tolerance than pure-f32 because the 512-deep conv
    # contraction uses bf16 operands (f32 accumulation).
    np.testing.assert_allclose(np.asarray(out), np.asarray(ref),
                               atol=5e-3, rtol=5e-3)

    print("KERNEL_OK")
</pallas_src>

<mosaic_0001>
module attributes {stable_mosaic.version = 11 : i64} {
  func.func @_lane_exist_kernel(%arg0: i32, %arg1: memref<1x512x144xf32, #tpu.memory_space<vmem>>, %arg2: memref<288x512xbf16, #tpu.memory_space<vmem>>, %arg3: memref<32x1xf32, #tpu.memory_space<vmem>>, %arg4: memref<5x32xf32, #tpu.memory_space<vmem>>, %arg5: memref<5x1xf32, #tpu.memory_space<vmem>>, %arg6: memref<2x144xf32, #tpu.memory_space<vmem>>, %arg7: memref<144x640xf32, #tpu.memory_space<vmem>>, %arg8: memref<1x128xf32, #tpu.memory_space<vmem>>, %arg9: memref<128x4xf32, #tpu.memory_space<vmem>>, %arg10: memref<1x4xf32, #tpu.memory_space<vmem>>, %arg11: memref<1x1x4xf32, #tpu.memory_space<vmem>>, %arg12: memref<288x324xf32, #tpu.memory_space<vmem>>, %arg13: memref<5x157xf32, #tpu.memory_space<vmem>>) attributes {dimension_semantics = [#tpu.dimension_semantics<parallel>], iteration_bounds = array<i64: 2>, scalar_prefetch = 0 : i64, scratch_operands = 2 : i64, tpu.core_type = #tpu.core_type<tc>, window_params = [{transform_indices = @transform_0, window_bounds = array<i64: 1, 512, 144>}, {pipeline_mode = #tpu.pipeline_mode<synchronous>, transform_indices = @transform_1, window_bounds = array<i64: 288, 512>}, {pipeline_mode = #tpu.pipeline_mode<synchronous>, transform_indices = @transform_2, window_bounds = array<i64: 32, 1>}, {pipeline_mode = #tpu.pipeline_mode<synchronous>, transform_indices = @transform_3, window_bounds = array<i64: 5, 32>}, {pipeline_mode = #tpu.pipeline_mode<synchronous>, transform_indices = @transform_4, window_bounds = array<i64: 5, 1>}, {pipeline_mode = #tpu.pipeline_mode<synchronous>, transform_indices = @transform_5, window_bounds = array<i64: 2, 144>}, {pipeline_mode = #tpu.pipeline_mode<synchronous>, transform_indices = @transform_6, window_bounds = array<i64: 144, 640>}, {pipeline_mode = #tpu.pipeline_mode<synchronous>, transform_indices = @transform_7, window_bounds = array<i64: 1, 128>}, {pipeline_mode = #tpu.pipeline_mode<synchronous>, transform_indices = @transform_8, window_bounds = array<i64: 128, 4>}, {pipeline_mode = #tpu.pipeline_mode<synchronous>, transform_indices = @transform_9, window_bounds = array<i64: 1, 4>}, {transform_indices = @transform_10, window_bounds = array<i64: 1, 1, 4>}]} {
    %c0 = arith.constant 0 : index
    %c0_0 = arith.constant 0 : index
    %c0_1 = arith.constant 0 : index
    %0 = vector.load %arg1[%c0, %c0_0, %c0_1] : memref<1x512x144xf32, #tpu.memory_space<vmem>>, vector<1x512x144xf32>
    %1 = vector.shape_cast %0 : vector<1x512x144xf32> to vector<512x144xf32>
    %2 = arith.truncf %1 : vector<512x144xf32> to vector<512x144xbf16>
    %c0_2 = arith.constant 0 : index
    %c0_3 = arith.constant 0 : index
    %3 = vector.load %arg2[%c0_2, %c0_3] : memref<288x512xbf16, #tpu.memory_space<vmem>>, vector<288x512xbf16>
    %cst = arith.constant dense<0.000000e+00> : vector<288x144xf32>
    %4 = tpu.matmul %3, %2, %cst {dimension_numbers = #tpu.dot_dimension_numbers<[1], [0], [0], [1], [0, 0, 1, 1], [], []>} : vector<288x512xbf16>, vector<512x144xbf16>, vector<288x144xf32> -> vector<288x144xf32>
    %cst_4 = arith.constant 0.000000e+00 : f32
    %5 = vector.broadcast %cst_4 : f32 to vector<288x52xf32>
    %c0_5 = arith.constant 0 : index
    %c76 = arith.constant 76 : index
    %6 = vector.load %arg12[%c0_5, %c76] : memref<288x324xf32, #tpu.memory_space<vmem>>, vector<288x52xf32>
    tpu.vector_store %arg12[%c0_5, %c76], %5 {strides = array<i32>} : memref<288x324xf32, #tpu.memory_space<vmem>>, vector<288x52xf32>,
    %cst_6 = arith.constant 0.000000e+00 : f32
    %7 = vector.broadcast %cst_6 : f32 to vector<288x52xf32>
    %c0_7 = arith.constant 0 : index
    %c272 = arith.constant 272 : index
    %8 = vector.load %arg12[%c0_7, %c272] : memref<288x324xf32, #tpu.memory_space<vmem>>, vector<288x52xf32>
    tpu.vector_store %arg12[%c0_7, %c272], %7 {strides = array<i32>} : memref<288x324xf32, #tpu.memory_space<vmem>>, vector<288x52xf32>,
    %c0_8 = arith.constant 0 : index
    %c128 = arith.constant 128 : index
    %9 = vector.load %arg12[%c0_8, %c128] : memref<288x324xf32, #tpu.memory_space<vmem>>, vector<288x144xf32>
    tpu.vector_store %arg12[%c0_8, %c128], %4 {strides = array<i32>} : memref<288x324xf32, #tpu.memory_space<vmem>>, vector<288x144xf32>,
    %c0_9 = arith.constant 0 : index
    %c0_10 = arith.constant 0 : index
    %10 = vector.load %arg6[%c0_9, %c0_10] : memref<2x144xf32, #tpu.memory_space<vmem>>, vector<1x144xf32>
    %c1 = arith.constant 1 : index
    %c0_11 = arith.constant 0 : index
    %11 = vector.load %arg6[%c1, %c0_11] : memref<2x144xf32, #tpu.memory_space<vmem>>, vector<1x144xf32>
    %c128_12 = arith.constant 128 : index
    %c128_13 = arith.constant 128 : index
    %12 = vector.load %arg12[%c128_12, %c128_13] : memref<288x324xf32, #tpu.memory_space<vmem>>, vector<32x144xf32>
    %c0_14 = arith.constant 0 : index
    %c76_15 = arith.constant 76 : index
    %13 = vector.load %arg12[%c0_14, %c76_15] : memref<288x324xf32, #tpu.memory_space<vmem>>, vector<32x144xf32>
    %14 = vector.broadcast %10 : vector<1x144xf32> to vector<32x144xf32>
    %15 = arith.mulf %13, %14 : vector<32x144xf32>
    %16 = arith.addf %12, %15 : vector<32x144xf32>
    %c32 = arith.constant 32 : index
    %c80 = arith.constant 80 : index
    %17 = vector.load %arg12[%c32, %c80] : memref<288x324xf32, #tpu.memory_space<vmem>>, vector<32x144xf32>
    %18 = arith.addf %16, %17 : vector<32x144xf32>
    %c64 = arith.constant 64 : index
    %c84 = arith.constant 84 : index
    %19 = vector.load %arg12[%c64, %c84] : memref<288x324xf32, #tpu.memory_space<vmem>>, vector<32x144xf32>
    %20 = vector.broadcast %11 : vector<1x144xf32> to vector<32x144xf32>
    %21 = arith.mulf %19, %20 : vector<32x144xf32>
    %22 = arith.addf %18, %21 : vector<32x144xf32>
    %c96 = arith.constant 96 : index
    %c124 = arith.constant 124 : index
    %23 = vector.load %arg12[%c96, %c124] : memref<288x324xf32, #tpu.memory_space<vmem>>, vector<32x144xf32>
    %24 = vector.broadcast %10 : vector<1x144xf32> to vector<32x144xf32>
    %25 = arith.mulf %23, %24 : vector<32x144xf32>
    %26 = arith.addf %22, %25 : vector<32x144xf32>
    %c160 = arith.constant 160 : index
    %c132 = arith.constant 132 : index
    %27 = vector.load %arg12[%c160, %c132] : memref<288x324xf32, #tpu.memory_space<vmem>>, vector<32x144xf32>
    %28 = vector.broadcast %11 : vector<1x144xf32> to vector<32x144xf32>
    %29 = arith.mulf %27, %28 : vector<32x144xf32>
    %30 = arith.addf %26, %29 : vector<32x144xf32>
    %c192 = arith.constant 192 : index
    %c172 = arith.constant 172 : index
    %31 = vector.load %arg12[%c192, %c172] : memref<288x324xf32, #tpu.memory_space<vmem>>, vector<32x144xf32>
    %32 = vector.broadcast %10 : vector<1x144xf32> to vector<32x144xf32>
    %33 = arith.mulf %31, %32 : vector<32x144xf32>
    %34 = arith.addf %30, %33 : vector<32x144xf32>
    %c224 = arith.constant 224 : index
    %c176 = arith.constant 176 : index
    %35 = vector.load %arg12[%c224, %c176] : memref<288x324xf32, #tpu.memory_space<vmem>>, vector<32x144xf32>
    %36 = arith.addf %34, %35 : vector<32x144xf32>
    %c256 = arith.constant 256 : index
    %c180 = arith.constant 180 : index
    %37 = vector.load %arg12[%c256, %c180] : memref<288x324xf32, #tpu.memory_space<vmem>>, vector<32x144xf32>
    %38 = vector.broadcast %11 : vector<1x144xf32> to vector<32x144xf32>
    %39 = arith.mulf %37, %38 : vector<32x144xf32>
    %40 = arith.addf %36, %39 : vector<32x144xf32>
    %c0_16 = arith.constant 0 : index
    %c0_17 = arith.constant 0 : index
    %41 = vector.load %arg3[%c0_16, %c0_17] : memref<32x1xf32, #tpu.memory_space<vmem>>, vector<32x1xf32>
    %42 = vector.broadcast %41 : vector<32x1xf32> to vector<32x144xf32>
    %43 = arith.addf %40, %42 : vector<32x144xf32>
    %cst_18 = arith.constant 0.000000e+00 : f32
    %44 = vector.broadcast %cst_18 : f32 to vector<32x144xf32>
    %45 = arith.maximumf %43, %44 : vector<32x144xf32>
    %c0_19 = arith.constant 0 : index
    %c0_20 = arith.constant 0 : index
    %46 = vector.load %arg4[%c0_19, %c0_20] : memref<5x32xf32, #tpu.memory_space<vmem>>, vector<5x32xf32>
    %cst_21 = arith.constant dense<0.000000e+00> : vector<5x144xf32>
    %47 = tpu.matmul %46, %45, %cst_21 {dimension_numbers = #tpu.dot_dimension_numbers<[1], [0], [0], [1], [0, 0, 1, 1], [], []>} : vector<5x32xf32>, vector<32x144xf32>, vector<5x144xf32> -> vector<5x144xf32>
    %c0_22 = arith.constant 0 : index
    %c0_23 = arith.constant 0 : index
    %48 = vector.load %arg5[%c0_22, %c0_23] : memref<5x1xf32, #tpu.memory_space<vmem>>, vector<5x1xf32>
    %49 = vector.broadcast %48 : vector<5x1xf32> to vector<5x144xf32>
    %50 = arith.addf %47, %49 : vector<5x144xf32>
    %cst_24 = arith.constant dense<0xFF800000> : vector<144xf32>
    %51 = vector.multi_reduction <maximumf>, %50, %cst_24 [0] : vector<5x144xf32> to vector<144xf32>
    %52 = vector.shape_cast %51 : vector<144xf32> to vector<1x144xf32>
    %53 = vector.broadcast %52 : vector<1x144xf32> to vector<5x144xf32>
    %54 = arith.subf %50, %53 : vector<5x144xf32>
    %55 = math.exp %54 : vector<5x144xf32>
    %cst_25 = arith.constant dense<0.000000e+00> : vector<144xf32>
    %56 = vector.multi_reduction <add>, %55, %cst_25 [0] : vector<5x144xf32> to vector<144xf32>
    %57 = vector.shape_cast %56 : vector<144xf32> to vector<1x144xf32>
    %58 = vector.broadcast %57 : vector<1x144xf32> to vector<5x144xf32>
    %59 = arith.divf %55, %58 : vector<5x144xf32>
    %cst_26 = arith.constant 0.000000e+00 : f32
    %60 = vector.broadcast %cst_26 : f32 to vector<5x13xf32>
    %c0_27 = arith.constant 0 : index
    %c144 = arith.constant 144 : index
    %61 = vector.load %arg13[%c0_27, %c144] : memref<5x157xf32, #tpu.memory_space<vmem>>, vector<5x13xf32>
    tpu.vector_store %arg13[%c0_27, %c144], %60 {strides = array<i32>} : memref<5x157xf32, #tpu.memory_space<vmem>>, vector<5x13xf32>,
    %c0_28 = arith.constant 0 : index
    %c0_29 = arith.constant 0 : index
    %62 = vector.load %arg13[%c0_28, %c0_29] : memref<5x157xf32, #tpu.memory_space<vmem>>, vector<5x144xf32>
    tpu.vector_store %arg13[%c0_28, %c0_29], %59 {strides = array<i32>} : memref<5x157xf32, #tpu.memory_space<vmem>>, vector<5x144xf32>,
    %c0_30 = arith.constant 0 : index
    %c1_31 = arith.constant 1 : index
    %63 = vector.load %arg13[%c0_30, %c1_31] : memref<5x157xf32, #tpu.memory_space<vmem>>, vector<5x144xf32>
    %64 = arith.maximumf %59, %63 : vector<5x144xf32>
    %c0_32 = arith.constant 0 : index
    %c12 = arith.constant 12 : index
    %65 = vector.load %arg13[%c0_32, %c12] : memref<5x157xf32, #tpu.memory_space<vmem>>, vector<5x144xf32>
    %c0_33 = arith.constant 0 : index
    %c13 = arith.constant 13 : index
    %66 = vector.load %arg13[%c0_33, %c13] : memref<5x157xf32, #tpu.memory_space<vmem>>, vector<5x144xf32>
    %67 = arith.maximumf %65, %66 : vector<5x144xf32>
    %68 = arith.maximumf %64, %67 : vector<5x144xf32>
    %c0_34 = arith.constant 0 : index
    %c0_35 = arith.constant 0 : index
    %69 = vector.load %arg7[%c0_34, %c0_35] : memref<144x640xf32, #tpu.memory_space<vmem>>, vector<144x640xf32>
    %cst_36 = arith.constant dense<0.000000e+00> : vector<5x640xf32>
    %70 = tpu.matmul %68, %69, %cst_36 {dimension_numbers = #tpu.dot_dimension_numbers<[1], [0], [0], [1], [0, 0, 1, 1], [], []>} : vector<5x144xf32>, vector<144x640xf32>, vector<5x640xf32> -> vector<5x640xf32>
    %c0_37 = arith.constant 0 : index
    %c0_38 = arith.constant 0 : index
    %71 = vector.load %arg8[%c0_37, %c0_38] : memref<1x128xf32, #tpu.memory_space<vmem>>, vector<1x128xf32>
    %72 = vector.extract_strided_slice %70 {offsets = [0, 0], sizes = [1, 128], strides = [1, 1]} : vector<5x640xf32> to vector<1x128xf32>
    %73 = arith.addf %71, %72 : vector<1x128xf32>
    %74 = vector.extract_strided_slice %70 {offsets = [1, 128], sizes = [1, 128], strides = [1, 1]} : vector<5x640xf32> to vector<1x128xf32>
    %75 = arith.addf %73, %74 : vector<1x128xf32>
    %76 = vector.extract_strided_slice %70 {offsets = [2, 256], sizes = [1, 128], strides = [1, 1]} : vector<5x640xf32> to vector<1x128xf32>
    %77 = arith.addf %75, %76 : vector<1x128xf32>
    %78 = vector.extract_strided_slice %70 {offsets = [3, 384], sizes = [1, 128], strides = [1, 1]} : vector<5x640xf32> to vector<1x128xf32>
    %79 = arith.addf %77, %78 : vector<1x128xf32>
    %80 = vector.extract_strided_slice %70 {offsets = [4, 512], sizes = [1, 128], strides = [1, 1]} : vector<5x640xf32> to vector<1x128xf32>
    %81 = arith.addf %79, %80 : vector<1x128xf32>
    %cst_39 = arith.constant 0.000000e+00 : f32
    %82 = vector.broadcast %cst_39 : f32 to vector<1x128xf32>
    %83 = arith.maximumf %81, %82 : vector<1x128xf32>
    %c0_40 = arith.constant 0 : index
    %c0_41 = arith.constant 0 : index
    %84 = vector.load %arg9[%c0_40, %c0_41] : memref<128x4xf32, #tpu.memory_space<vmem>>, vector<128x4xf32>
    %cst_42 = arith.constant dense<0.000000e+00> : vector<1x4xf32>
    %85 = tpu.matmul %83, %84, %cst_42 {dimension_numbers = #tpu.dot_dimension_numbers<[1], [0], [0], [1], [0, 0, 1, 1], [], []>} : vector<1x128xf32>, vector<128x4xf32>, vector<1x4xf32> -> vector<1x4xf32>
    %c0_43 = arith.constant 0 : index
    %c0_44 = arith.constant 0 : index
    %86 = vector.load %arg10[%c0_43, %c0_44] : memref<1x4xf32, #tpu.memory_space<vmem>>, vector<1x4xf32>
    %87 = arith.addf %85, %86 : vector<1x4xf32>
    %cst_45 = arith.constant 0.000000e+00 : f32
    %88 = vector.broadcast %cst_45 : f32 to vector<1x4xf32>
    %89 = arith.subf %88, %87 : vector<1x4xf32>
    %90 = math.exp %89 : vector<1x4xf32>
    %cst_46 = arith.constant 1.000000e+00 : f32
    %91 = vector.broadcast %cst_46 : f32 to vector<1x4xf32>
    %92 = arith.addf %91, %90 : vector<1x4xf32>
    %cst_47 = arith.constant 1.000000e+00 : f32
    %93 = vector.broadcast %cst_47 : f32 to vector<1x4xf32>
    %94 = arith.divf %93, %92 : vector<1x4xf32>
    %c0_48 = arith.constant 0 : index
    %c0_49 = arith.constant 0 : index
    %c0_50 = arith.constant 0 : index
    %95 = vector.load %arg11[%c0_48, %c0_49, %c0_50] : memref<1x1x4xf32, #tpu.memory_space<vmem>>, vector<1x1x4xf32>
    %96 = vector.shape_cast %95 : vector<1x1x4xf32> to vector<1x4xf32>
    %97 = vector.shape_cast %94 : vector<1x4xf32> to vector<1x1x4xf32>
    tpu.vector_store %arg11[%c0_48, %c0_49, %c0_50], %97 {strides = array<i32>} : memref<1x1x4xf32, #tpu.memory_space<vmem>>, vector<1x1x4xf32>,
    return
  }
  func.func @transform_0(%arg0: i32) -> (i32, i32, i32) {
    %c0_i32 = arith.constant 0 : i32
    %c0_i32_0 = arith.constant 0 : i32
    %c0_i32_1 = arith.constant 0 : i32
    return %arg0, %c0_i32, %c0_i32_0 : i32, i32, i32
  }
  func.func @transform_1(%arg0: i32) -> (i32, i32) {
    %c0_i32 = arith.constant 0 : i32
    %c0_i32_0 = arith.constant 0 : i32
    %c0_i32_1 = arith.constant 0 : i32
    return %c0_i32, %c0_i32_0 : i32, i32
  }
  func.func @transform_2(%arg0: i32) -> (i32, i32) {
    %c0_i32 = arith.constant 0 : i32
    %c0_i32_0 = arith.constant 0 : i32
    %c0_i32_1 = arith.constant 0 : i32
    return %c0_i32, %c0_i32_0 : i32, i32
  }
  func.func @transform_3(%arg0: i32) -> (i32, i32) {
    %c0_i32 = arith.constant 0 : i32
    %c0_i32_0 = arith.constant 0 : i32
    %c0_i32_1 = arith.constant 0 : i32
    return %c0_i32, %c0_i32_0 : i32, i32
  }
  func.func @transform_4(%arg0: i32) -> (i32, i32) {
    %c0_i32 = arith.constant 0 : i32
    %c0_i32_0 = arith.constant 0 : i32
    %c0_i32_1 = arith.constant 0 : i32
    return %c0_i32, %c0_i32_0 : i32, i32
  }
  func.func @transform_5(%arg0: i32) -> (i32, i32) {
    %c0_i32 = arith.constant 0 : i32
    %c0_i32_0 = arith.constant 0 : i32
    %c0_i32_1 = arith.constant 0 : i32
    return %c0_i32, %c0_i32_0 : i32, i32
  }
  func.func @transform_6(%arg0: i32) -> (i32, i32) {
    %c0_i32 = arith.constant 0 : i32
    %c0_i32_0 = arith.constant 0 : i32
    %c0_i32_1 = arith.constant 0 : i32
    return %c0_i32, %c0_i32_0 : i32, i32
  }
  func.func @transform_7(%arg0: i32) -> (i32, i32) {
    %c0_i32 = arith.constant 0 : i32
    %c0_i32_0 = arith.constant 0 : i32
    %c0_i32_1 = arith.constant 0 : i32
    return %c0_i32, %c0_i32_0 : i32, i32
  }
  func.func @transform_8(%arg0: i32) -> (i32, i32) {
    %c0_i32 = arith.constant 0 : i32
    %c0_i32_0 = arith.constant 0 : i32
    %c0_i32_1 = arith.constant 0 : i32
    return %c0_i32, %c0_i32_0 : i32, i32
  }
  func.func @transform_9(%arg0: i32) -> (i32, i32) {
    %c0_i32 = arith.constant 0 : i32
    %c0_i32_0 = arith.constant 0 : i32
    %c0_i32_1 = arith.constant 0 : i32
    return %c0_i32, %c0_i32_0 : i32, i32
  }
  func.func @transform_10(%arg0: i32) -> (i32, i32, i32) {
    %c0_i32 = arith.constant 0 : i32
    %c0_i32_0 = arith.constant 0 : i32
    %c0_i32_1 = arith.constant 0 : i32
    return %arg0, %c0_i32, %c0_i32_0 : i32, i32, i32
  }
}

</mosaic_0001>

<bundles_post_ra>
// kernel: tpu_custom_call.1
= control target key start
LH: loop header
LB: loop body
LE: loop exit
PB: predicated region body
PF: predicated region fallthrough
CT: control target
= control target key end

     0   :  { %s4871_s0 = inlined_call_operand.vmem [shape: f32[2,512,144], index: 0, kind: input, shape index: {}]   ;;  %s4872_s1 = inlined_call_operand.vmem [shape: bf16[288,512], index: 1, kind: input, shape index: {}]   ;;  %s4873_s2 = inlined_call_operand.vmem [shape: f32[32,1], index: 2, kind: input, shape index: {}]   ;;  %s4874_s3 = inlined_call_operand.vmem [shape: f32[5,32], index: 3, kind: input, shape index: {}]   ;;  %s4875_s4 = inlined_call_operand.vmem [shape: f32[5,1], index: 4, kind: input, shape index: {}]   ;;  %s4876_s5 = inlined_call_operand.vmem [shape: f32[2,144], index: 5, kind: input, shape index: {}]   ;;  %s4877_s6 = inlined_call_operand.vmem [shape: f32[144,640], index: 6, kind: input, shape index: {}]   ;;  %s4878_s7 = inlined_call_operand.vmem [shape: f32[1,128], index: 7, kind: input, shape index: {}]   ;;  %s4879_s8 = inlined_call_operand.vmem [shape: f32[128,4], index: 8, kind: input, shape index: {}]   ;;  %s4880_s9 = inlined_call_operand.vmem [shape: f32[1,4], index: 9, kind: input, shape index: {}]   ;;  %s4881_s10 = inlined_call_operand.hbm [shape: f32[2,1,4], index: 10, kind: output, shape index: {}]  }
   0x1   :  { %4896 = sst [smem:[#allocation7_spill]] %s4871_s0 }
   0x2   :  { %15 = vsyncpa [#allocation5], 0 }
   0x3   :  { %17 = vsyncpa [#allocation5 + $0x1], 0  ;;  %s3545_s13 = smov 0   ;;  %s3547_s14 = smov 0  }
   0x4   :  { %s3549_s15 = smov 0   ;;  %s3551_s16 = smov 0  }
   0x5 LB: > { %s3566_s17 = sadd.s32 4294967295, %s3472_s16   ;;  %s2860_s18 = sadd.s32 4294967294, %s3472_s16   ;;  %s3472_s16 = sphi %s3551_s16, %s4910_s16   ;;  %s3468_s15 = sphi %s3549_s15, %s4909_s15   ;;  %s3464_s14 = sphi %s3547_s14, %s4908_s14   ;;  %s3460_s13 = sphi %s3545_s13, %s4907_s13  }
   0x6   : > { %s3570_s19 = sadd.s32 1, %s3472_s16   ;;  %s245_s20 = sadd.s32 1, %s3468_s15 }
   0x7   : > { %s242_s21 = ssub.s32 %s3472_s16, %s3570_s19  ;;  %p255_p0 = scmp.ne.s32.totalorder %s3468_s15, %s3464_s14 }
   0x8   : > { %p243_p1 = scmp.eq.s32.totalorder %s242_s21, 0  ;;  %p256_p2 = scmp.eq.s32.totalorder %s3566_s17, 1 }
   0x9   : > { %p261_p3 = scmp.ne.s32.totalorder %s3464_s14, %s3460_s13  ;;  %p262_p4 = scmp.eq.s32.totalorder %s2860_s18, 1 }
   0xa   : > { %s3581_s22 = scalar_select %p243_p1, %s3468_s15, %s245_s20  }
   0xb   : > { %p3583_p5 = por %p256_p2, %p255_p0  ;;  %p3587_p6 = por %p262_p4, %p261_p3 }
   0xc   : > { %p2863_p7 = scmp.ge.s32.totalorder %s3472_s16, 1  ;;  %p315_p8 = scmp.lt.s32.totalorder %s3472_s16, 3 }
   0xe   : > { %p316_p9 = pnand %p2863_p7, %p315_p8 }
   0xf   : > { %p352_p10 = scmp.lt.s32.totalorder (!%p316_p9), %s3566_s17, 1  ;;  %v3292_v0 = vld [vmem:[%s4872_s1 + $0x4] ss:$16 sps:$4 sm:$0xff] (!%p316_p9)   ;;  %s4899_s0 = sld [smem:[#allocation7_spill]] (!%p316_p9)  ;;  %vm1407_vm0 = vcmask (!%p316_p9), 1048160   ;;  %vm1586_vm1 = vcmask (!%p316_p9), 621568  }
  0x10   : > { %319 = sbr.rel (%p316_p9) target bundleno = 1721 (0x6b9), region = 60  ;;  %1013 = vmatprep.mubr.bf16.mxu0 (!%p316_p9), %v3292_v0  ;;  %s4886_s20 = smov (!%p316_p9), 124   ;;  %vm1444_vm2 = vcmask (!%p316_p9), 556160   ;;  %vm1482_vm3 = vcmask (!%p316_p9), 130048   ;;  %vm1717_vm4 = vcmask (!%p316_p9), 687104   ;;  %vm1790_vm5 = vcmask (!%p316_p9), 1014784  }
  0x11   : > { %s4884_s26 = smov (!%p316_p9), 84   ;;  %s4888_s21 = smov (!%p316_p9), 44   ;;  %vm1843_vm6 = vcmask (!%p316_p9), 31744   ;;  %vm1753_vm7 = vcmask (!%p316_p9), 359424   ;;  %vm1622_vm8 = vcmask (!%p316_p9), 424960   ;;  %vm1675_vm9 = vcmask (!%p316_p9), 392192  }
  0x12   : > { %s4894_s25 = smov (!%p316_p9), 52   ;;  %s4890_s18 = smov (!%p316_p9), 48   ;;  %vm2034_vm10 = vcmask (!%p316_p9), 654336   ;;  %vm2169_vm11 = vcmask (!%p316_p9), 261120   ;;  %vm2284_vm12 = vcmask (!%p316_p9), 233600   ;;  %vm2244_vm13 = vcmask (!%p316_p9), 1044480  }
  0x13   : > { %s4901_s12 = smov (!%p316_p9), 44   ;;  %vm2252_vm14 = vcmask (!%p316_p9), 126976   ;;  %vm2296_vm15 = vcmask (!%p316_p9), 1039360  }
  0x17   : > { %s353_s27 = scalar_select %p352_p10, %s3566_s17, 1 }
  0x19   : > { %s2946_s28 = sshll.u32 %s353_s27, 10  ;;  %s4882_s27 = smov 76  }
  0x1a   : > { %s3601_s11 = scalar_lea.vmem %s4899_s0, %s2946_s28  ;;  %s4902_s0 = smov 52  }
  0x1b   : > { %v358_v1 = vld [vmem:[%s3601_s11 + $0x8] sm:$0xff]  ;;  %v360_v2 = vld [vmem:[%s3601_s11 + $0x18] sm:$0xff]  ;;  %v357_v3 = vld [vmem:[%s3601_s11] sm:$0xff] }
  0x1c   : > { %v486_v4 = vpack.c.bf16 %v360_v2, %v358_v1  ;;  %v359_v5 = vld [vmem:[%s3601_s11 + $0x10] sm:$0xff]  ;;  %v362_v6 = vld [vmem:[%s3601_s11 + $0x28] sm:$0xff]  ;;  %v364_v7 = vld [vmem:[%s3601_s11 + $0x38] sm:$0xff] }
  0x1d   : > { %v485_v8 = vpack.c.bf16 %v359_v5, %v357_v3  ;;  %v488_v9 = vpack.c.bf16 %v364_v7, %v362_v6  ;;  %v361_v10 = vld [vmem:[%s3601_s11 + $0x20] sm:$0xff]  ;;  %v363_v11 = vld [vmem:[%s3601_s11 + $0x30] sm:$0xff]  ;;  %v366_v12 = vld [vmem:[%s3601_s11 + $0x48] sm:$0xff] }
  0x1e   : > { %981 = vmatprep.subr.bf16.mxu0 %v486_v4  ;;  %v368_v13 = vld [vmem:[%s3601_s11 + $0x58] sm:$0xff]  ;;  %3130 = vmatprep.subr.bf16.mxu1 %v486_v4  ;;  %v487_v14 = vpack.c.bf16 %v363_v11, %v361_v10  ;;  %v365_v16 = vld [vmem:[%s3601_s11 + $0x40] sm:$0xff]  ;;  %v367_v17 = vld [vmem:[%s3601_s11 + $0x50] sm:$0xff] }
  0x1f   : > { %982 = vmatpush1.bf16.msra.mxu0 %v485_v8  ;;  %3146 = vmatpush1.bf16.msra.mxu1 %v485_v8  ;;  %v490_v15 = vpack.c.bf16 %v368_v13, %v366_v12  ;;  %v370_v18 = vld [vmem:[%s3601_s11 + $0x68] sm:$0xff]  ;;  %v372_v19 = vld [vmem:[%s3601_s11 + $0x78] sm:$0xff]  ;;  %v489_v20 = vpack.c.bf16 %v367_v17, %v365_v16  ;;  %v369_v22 = vld [vmem:[%s3601_s11 + $0x60] sm:$0xff] }
  0x20   : > { %983 = vmatprep.subr.bf16.mxu0 %v488_v9  ;;  %3131 = vmatprep.subr.bf16.mxu1 %v488_v9  ;;  %v492_v21 = vpack.c.bf16 %v372_v19, %v370_v18  ;;  %v371_v23 = vld [vmem:[%s3601_s11 + $0x70] sm:$0xff]  ;;  %v374_v24 = vld [vmem:[%s3601_s11 + $0x88] sm:$0xff]  ;;  %v376_v25 = vld [vmem:[%s3601_s11 + $0x98] sm:$0xff] }
  0x21   : > { %v491_v26 = vpack.c.bf16 %v371_v23, %v369_v22  ;;  %v494_v27 = vpack.c.bf16 %v376_v25, %v374_v24  ;;  %v373_v28 = vld [vmem:[%s3601_s11 + $0x80] sm:$0xff]  ;;  %v375_v29 = vld [vmem:[%s3601_s11 + $0x90] sm:$0xff]  ;;  %v378_v30 = vld [vmem:[%s3601_s11 + $0xa8] sm:$0xff] }
  0x22   : > { %v380_v31 = vld [vmem:[%s3601_s11 + $0xb8] sm:$0xff]  ;;  %v493_v32 = vpack.c.bf16 %v375_v29, %v373_v28  ;;  %v377_v34 = vld [vmem:[%s3601_s11 + $0xa0] sm:$0xff]  ;;  %v379_v35 = vld [vmem:[%s3601_s11 + $0xb0] sm:$0xff] }
  0x23   : > { %984 = vmatpush1.bf16.msra.mxu0 %v487_v14  ;;  %3147 = vmatpush1.bf16.msra.mxu1 %v487_v14  ;;  %v496_v33 = vpack.c.bf16 %v380_v31, %v378_v30  ;;  %v382_v36 = vld [vmem:[%s3601_s11 + $0xc8] sm:$0xff]  ;;  %v384_v37 = vld [vmem:[%s3601_s11 + $0xd8] sm:$0xff]  ;;  %v495_v38 = vpack.c.bf16 %v379_v35, %v377_v34  ;;  %v381_v40 = vld [vmem:[%s3601_s11 + $0xc0] sm:$0xff] }
  0x24   : > { %985 = vmatprep.subr.bf16.mxu0 %v490_v15  ;;  %3132 = vmatprep.subr.bf16.mxu1 %v490_v15  ;;  %v498_v39 = vpack.c.bf16 %v384_v37, %v382_v36  ;;  %v383_v41 = vld [vmem:[%s3601_s11 + $0xd0] sm:$0xff]  ;;  %v386_v42 = vld [vmem:[%s3601_s11 + $0xe8] sm:$0xff]  ;;  %v388_v43 = vld [vmem:[%s3601_s11 + $0xf8] sm:$0xff] }
  0x25   : > { %v497_v44 = vpack.c.bf16 %v383_v41, %v381_v40  ;;  %v500_v45 = vpack.c.bf16 %v388_v43, %v386_v42  ;;  %v385_v46 = vld [vmem:[%s3601_s11 + $0xe0] sm:$0xff]  ;;  %v387_v47 = vld [vmem:[%s3601_s11 + $0xf0] sm:$0xff]  ;;  %v390_v48 = vld [vmem:[%s3601_s11 + $0x108] sm:$0xff] }
  0x26   : > { %v392_v49 = vld [vmem:[%s3601_s11 + $0x118] sm:$0xff]  ;;  %v499_v50 = vpack.c.bf16 %v387_v47, %v385_v46  ;;  %v389_v52 = vld [vmem:[%s3601_s11 + $0x100] sm:$0xff]  ;;  %v391_v53 = vld [vmem:[%s3601_s11 + $0x110] sm:$0xff] }
  0x27   : > { %986 = vmatpush1.bf16.msra.mxu0 %v489_v20  ;;  %3148 = vmatpush1.bf16.msra.mxu1 %v489_v20  ;;  %v502_v51 = vpack.c.bf16 %v392_v49, %v390_v48  ;;  %v394_v54 = vld [vmem:[%s3601_s11 + $0x128] sm:$0xff]  ;;  %v396_v55 = vld [vmem:[%s3601_s11 + $0x138] sm:$0xff]  ;;  %v501_v56 = vpack.c.bf16 %v391_v53, %v389_v52  ;;  %v393_v58 = vld [vmem:[%s3601_s11 + $0x120] sm:$0xff] }
  0x28   : > { %987 = vmatprep.subr.bf16.mxu0 %v492_v21  ;;  %3133 = vmatprep.subr.bf16.mxu1 %v492_v21  ;;  %v504_v57 = vpack.c.bf16 %v396_v55, %v394_v54  ;;  %v395_v59 = vld [vmem:[%s3601_s11 + $0x130] sm:$0xff]  ;;  %v398_v60 = vld [vmem:[%s3601_s11 + $0x148] sm:$0xff]  ;;  %v400_v61 = vld [vmem:[%s3601_s11 + $0x158] sm:$0xff] }
  0x29   : > { %v503_v62 = vpack.c.bf16 %v395_v59, %v393_v58  ;;  %v506_v63 = vpack.c.bf16 %v400_v61, %v398_v60  ;;  %v397_v0 = vld [vmem:[%s3601_s11 + $0x140] sm:$0xff]  ;;  %v399_v1 = vld [vmem:[%s3601_s11 + $0x150] sm:$0xff]  ;;  %v402_v2 = vld [vmem:[%s3601_s11 + $0x168] sm:$0xff] }
  0x2a   : > { %v404_v3 = vld [vmem:[%s3601_s11 + $0x178] sm:$0xff]  ;;  %v505_v4 = vpack.c.bf16 %v399_v1, %v397_v0  ;;  %v401_v6 = vld [vmem:[%s3601_s11 + $0x160] sm:$0xff]  ;;  %v403_v7 = vld [vmem:[%s3601_s11 + $0x170] sm:$0xff] }
  0x2b   : > { %988 = vmatpush1.bf16.msra.mxu0 %v491_v26  ;;  %3149 = vmatpush1.bf16.msra.mxu1 %v491_v26  ;;  %v508_v5 = vpack.c.bf16 %v404_v3, %v402_v2  ;;  %v406_v8 = vld [vmem:[%s3601_s11 + $0x188] sm:$0xff]  ;;  %v408_v9 = vld [vmem:[%s3601_s11 + $0x198] sm:$0xff]  ;;  %v507_v10 = vpack.c.bf16 %v403_v7, %v401_v6  ;;  %v405_v12 = vld [vmem:[%s3601_s11 + $0x180] sm:$0xff] }
  0x2c   : > { %989 = vmatprep.subr.bf16.mxu0 %v494_v27  ;;  %3134 = vmatprep.subr.bf16.mxu1 %v494_v27  ;;  %v510_v11 = vpack.c.bf16 %v408_v9, %v406_v8  ;;  %v407_v13 = vld [vmem:[%s3601_s11 + $0x190] sm:$0xff]  ;;  %v410_v14 = vld [vmem:[%s3601_s11 + $0x1a8] sm:$0xff]  ;;  %v412_v15 = vld [vmem:[%s3601_s11 + $0x1b8] sm:$0xff] }
  0x2d   : > { %v509_v16 = vpack.c.bf16 %v407_v13, %v405_v12  ;;  %v409_v17 = vld [vmem:[%s3601_s11 + $0x1a0] sm:$0xff]  ;;  %v512_v18 = vpack.c.bf16 %v412_v15, %v410_v14  ;;  %v411_v19 = vld [vmem:[%s3601_s11 + $0x1b0] sm:$0xff]  ;;  %v414_v20 = vld [vmem:[%s3601_s11 + $0x1c8] sm:$0xff] }
  0x2e   : > { %v416_v21 = vld [vmem:[%s3601_s11 + $0x1d8] sm:$0xff]  ;;  %v511_v22 = vpack.c.bf16 %v411_v19, %v409_v17  ;;  %v413_v23 = vld [vmem:[%s3601_s11 + $0x1c0] sm:$0xff]  ;;  %v415_v25 = vld [vmem:[%s3601_s11 + $0x1d0] sm:$0xff] }
  0x2f   : > { %990 = vmatpush1.bf16.msra.mxu0 %v493_v32  ;;  %3150 = vmatpush1.bf16.msra.mxu1 %v493_v32  ;;  %v514_v24 = vpack.c.bf16 %v416_v21, %v414_v20  ;;  %v418_v26 = vld [vmem:[%s3601_s11 + $0x1e8] sm:$0xff]  ;;  %v420_v27 = vld [vmem:[%s3601_s11 + $0x1f8] sm:$0xff]  ;;  %v513_v28 = vpack.c.bf16 %v415_v25, %v413_v23  ;;  %v417_v29 = vld [vmem:[%s3601_s11 + $0x1e0] sm:$0xff] }
  0x30   : > { %991 = vmatprep.subr.bf16.mxu0 %v496_v33  ;;  %3135 = vmatprep.subr.bf16.mxu1 %v496_v33  ;;  %v419_v30 = vld [vmem:[%s3601_s11 + $0x1f0] sm:$0xff]  ;;  %v516_v31 = vpack.c.bf16 %v420_v27, %v418_v26  ;;  %v422_v32 = vld [vmem:[%s3601_s11 + $0x208] sm:$0xff]  ;;  %v424_v33 = vld [vmem:[%s3601_s11 + $0x218] sm:$0xff] }
  0x31   : > { %v421_v34 = vld [vmem:[%s3601_s11 + $0x200] sm:$0xff]  ;;  %v423_v35 = vld [vmem:[%s3601_s11 + $0x210] sm:$0xff]  ;;  %v515_v36 = vpack.c.bf16 %v419_v30, %v417_v29  ;;  %v426_v37 = vld [vmem:[%s3601_s11 + $0x228] sm:$0xff]  ;;  %v518_v40 = vpack.c.bf16 %v424_v33, %v422_v32 }
  0x32   : > { %v3293_v41 = vld [vmem:[%s4872_s1 + $0x24] ss:$16 sps:$4 sm:$0xff]   ;;  %v432_v46 = vld [vmem:[%s3601_s11 + $0x258] sm:$0xff]  ;;  %v3295_v53 = vld [vmem:[%s4872_s1 + $0x20] ss:$16 sps:$4 sm:$0xff]  }
  0x33   : > { %992 = vmatpush1.bf16.msra.mxu0 %v495_v38  ;;  %3151 = vmatpush1.bf16.msra.mxu1 %v495_v38  ;;  %v428_v38 = vld [vmem:[%s3601_s11 + $0x238] sm:$0xff]  ;;  %v425_v42 = vld [vmem:[%s3601_s11 + $0x220] sm:$0xff]  ;;  %v427_v43 = vld [vmem:[%s3601_s11 + $0x230] sm:$0xff] }
  0x34   : > { %993 = vmatprep.subr.bf16.mxu0 %v498_v39  ;;  %3136 = vmatprep.subr.bf16.mxu1 %v498_v39  ;;  %v3290_v39 = vld [vmem:[%s4872_s1] ss:$16 sps:$4 sm:$0xff]   ;;  %v520_v47 = vpack.c.bf16 %v428_v38, %v426_v37  ;;  %v436_v52 = vld [vmem:[%s3601_s11 + $0x278] sm:$0xff]  ;;  %v3296_v55 = vld [vmem:[%s4872_s1 + $0x44] ss:$16 sps:$4 sm:$0xff]  }
  0x35   : > { %v429_v48 = vld [vmem:[%s3601_s11 + $0x240] sm:$0xff]  ;;  %v431_v49 = vld [vmem:[%s3601_s11 + $0x250] sm:$0xff]  ;;  %v438_v60 = vld [vmem:[%s3601_s11 + $0x288] sm:$0xff] }
  0x36   : > { %v433_v58 = vld [vmem:[%s3601_s11 + $0x260] sm:$0xff]  ;;  %v435_v59 = vld [vmem:[%s3601_s11 + $0x270] sm:$0xff]  ;;  %v440_v61 = vld [vmem:[%s3601_s11 + $0x298] sm:$0xff] }
  0x37   : > { %994 = vmatpush1.bf16.msra.mxu0 %v497_v44  ;;  %3152 = vmatpush1.bf16.msra.mxu1 %v497_v44  ;;  %v517_v44 = vpack.c.bf16 %v423_v35, %v421_v34  ;;  %v523_v0 = vpack.c.bf16 %v435_v59, %v433_v58  ;;  %v526_v1 = vpack.c.bf16 %v440_v61, %v438_v60  ;;  %v437_v2 = vld [vmem:[%s3601_s11 + $0x280] sm:$0xff]  ;;  %v439_v3 = vld [vmem:[%s3601_s11 + $0x290] sm:$0xff]  ;;  %v446_v12 = vld [vmem:[%s3601_s11 + $0x2c8] sm:$0xff] }
  0x38   : > { %995 = vmatprep.subr.bf16.mxu0 %v500_v45  ;;  %3137 = vmatprep.subr.bf16.mxu1 %v500_v45  ;;  %v430_v45 = vld [vmem:[%s3601_s11 + $0x248] sm:$0xff]  ;;  %v3298_v6 = vld [vmem:[%s4872_s1 + $0x40] ss:$16 sps:$4 sm:$0xff]   ;;  %v3299_v7 = vld [vmem:[%s4872_s1 + $0x64] ss:$16 sps:$4 sm:$0xff]   ;;  %v525_v8 = vpack.c.bf16 %v439_v3, %v437_v2 }
  0x39   : > { %v522_v54 = vpack.c.bf16 %v432_v46, %v430_v45  ;;  %v448_v13 = vld [vmem:[%s3601_s11 + $0x2d8] sm:$0xff]  ;;  %v3350_v14 = vld [vmem:[%s4872_s1 + $0x144] ss:$16 sps:$4 sm:$0xff]   ;;  %v3352_v15 = vld [vmem:[%s4872_s1 + $0x140] ss:$16 sps:$4 sm:$0xff]  }
  0x3a   : > { %v445_v19 = vld [vmem:[%s3601_s11 + $0x2c0] sm:$0xff]  ;;  %v447_v20 = vld [vmem:[%s3601_s11 + $0x2d0] sm:$0xff]  ;;  %v452_v23 = vld [vmem:[%s3601_s11 + $0x2f8] sm:$0xff] }
  0x3b   : > { %996 = vmatpush1.bf16.msra.mxu0 %v499_v50  ;;  %3153 = vmatpush1.bf16.msra.mxu1 %v499_v50  ;;  %v519_v50 = vpack.c.bf16 %v427_v43, %v425_v42  ;;  %v3301_v25 = vld [vmem:[%s4872_s1 + $0x60] ss:$16 sps:$4 sm:$0xff]   ;;  %v3302_v27 = vld [vmem:[%s4872_s1 + $0x84] ss:$16 sps:$4 sm:$0xff]   ;;  %v454_v33 = vld [vmem:[%s3601_s11 + $0x308] sm:$0xff] }
  0x3c   : > { %997 = vmatprep.subr.bf16.mxu0 %v502_v51  ;;  %3138 = vmatprep.subr.bf16.mxu1 %v502_v51  ;;  %v434_v51 = vld [vmem:[%s3601_s11 + $0x268] sm:$0xff]  ;;  %v449_v30 = vld [vmem:[%s3601_s11 + $0x2e0] sm:$0xff]  ;;  %v456_v34 = vld [vmem:[%s3601_s11 + $0x318] sm:$0xff] }
  0x3d   : > { %v3356_v35 = vld [vmem:[%s4872_s1 + $0x164] ss:$16 sps:$4 sm:$0xff]   ;;  %v458_v42 = vld [vmem:[%s3601_s11 + $0x328] sm:$0xff]  ;;  %v460_v43 = vld [vmem:[%s3601_s11 + $0x338] sm:$0xff] }
  0x3e   : > { %v3304_v45 = vld [vmem:[%s4872_s1 + $0x80] ss:$16 sps:$4 sm:$0xff]   ;;  %v3305_v46 = vld [vmem:[%s4872_s1 + $0xa4] ss:$16 sps:$4 sm:$0xff]   ;;  %v466_v61 = vld [vmem:[%s3601_s11 + $0x368] sm:$0xff] }
  0x3f   : > { %998 = vmatpush1.bf16.msra.mxu0 %v501_v56  ;;  %3154 = vmatpush1.bf16.msra.mxu1 %v501_v56  ;;  %v521_v56 = vpack.c.bf16 %v431_v49, %v429_v48  ;;  %v536_v48 = vpack.c.bf16 %v460_v43, %v458_v42  ;;  %v457_v49 = vld [vmem:[%s3601_s11 + $0x320] sm:$0xff]  ;;  %v463_v59 = vld [vmem:[%s3601_s11 + $0x350] sm:$0xff] }
  0x40   : > { %999 = vmatprep.subr.bf16.mxu0 %v504_v57  ;;  %3139 = vmatprep.subr.bf16.mxu1 %v504_v57  ;;  %v524_v57 = vpack.c.bf16 %v436_v52, %v434_v51  ;;  %v462_v51 = vld [vmem:[%s3601_s11 + $0x348] sm:$0xff]  ;;  %v464_v52 = vld [vmem:[%s3601_s11 + $0x358] sm:$0xff]  ;;  %v461_v58 = vld [vmem:[%s3601_s11 + $0x340] sm:$0xff] }
  0x41   : > { %v465_v3 = vld [vmem:[%s3601_s11 + $0x360] sm:$0xff] }
  0x42   : > { %v3316_v43 = vld [vmem:[%s4872_s1 + $0x100] ss:$16 sps:$4 sm:$0xff]  }
  0x43   : > { %1000 = vmatpush1.bf16.msra.mxu0 %v503_v62  ;;  %3155 = vmatpush1.bf16.msra.mxu1 %v503_v62  ;;  %v3344_v62 = vld [vmem:[%s4872_s1 + $0x120] ss:$16 sps:$4 sm:$0xff]  }
  0x44   : > { %1001 = vmatprep.subr.bf16.mxu0 %v506_v63  ;;  %3140 = vmatprep.subr.bf16.mxu1 %v506_v63  ;;  %v3346_v63 = vld [vmem:[%s4872_s1 + $0x124] ss:$16 sps:$4 sm:$0xff]  }
  0x45   : > { %1103 = vmatprep.mubr.bf16.mxu1 %v3346_v63  ;;  %v3307_v63 = vld [vmem:[%s4872_s1 + $0xa0] ss:$16 sps:$4 sm:$0xff]  }
  0x47   : > { %1002 = vmatpush1.bf16.msra.mxu0 %v505_v4  ;;  %3156 = vmatpush1.bf16.msra.mxu1 %v505_v4  ;;  %v442_v4 = vld [vmem:[%s3601_s11 + $0x2a8] sm:$0xff] }
  0x48   : > { %1003 = vmatprep.subr.bf16.mxu0 %v508_v5  ;;  %3141 = vmatprep.subr.bf16.mxu1 %v508_v5  ;;  %v444_v5 = vld [vmem:[%s3601_s11 + $0x2b8] sm:$0xff] }
  0x49   : > { %v528_v9 = vpack.c.bf16 %v444_v5, %v442_v4  ;;  %v467_v4 = vld [vmem:[%s3601_s11 + $0x370] sm:$0xff]  ;;  %v470_v5 = vld [vmem:[%s3601_s11 + $0x388] sm:$0xff] }
  0x4b   : > { %1004 = vmatpush1.bf16.msra.mxu0 %v507_v10  ;;  %3157 = vmatpush1.bf16.msra.mxu1 %v507_v10  ;;  %v441_v10 = vld [vmem:[%s3601_s11 + $0x2a0] sm:$0xff] }
  0x4c   : > { %1005 = vmatprep.subr.bf16.mxu0 %v510_v11  ;;  %3142 = vmatprep.subr.bf16.mxu1 %v510_v11  ;;  %v443_v11 = vld [vmem:[%s3601_s11 + $0x2b0] sm:$0xff] }
  0x4d   : > { %v527_v17 = vpack.c.bf16 %v443_v11, %v441_v10  ;;  %v469_v11 = vld [vmem:[%s3601_s11 + $0x380] sm:$0xff] }
  0x4f   : > { %1006 = vmatpush1.bf16.msra.mxu0 %v509_v16  ;;  %3158 = vmatpush1.bf16.msra.mxu1 %v509_v16  ;;  %v1574_v16 = vlaneseq }
  0x50   : > { %1007 = vmatprep.subr.bf16.mxu0 %v512_v18  ;;  %3143 = vmatprep.subr.bf16.mxu1 %v512_v18  ;;  %v530_v18 = vpack.c.bf16 %v448_v13, %v446_v12  ;;  %v471_v12 = vld [vmem:[%s3601_s11 + $0x390] sm:$0xff]  ;;  %v474_v13 = vld [vmem:[%s3601_s11 + $0x3a8] sm:$0xff] }
  0x51   : > { %v3725_v21 = vshrl.u32 %v1574_v16, 7  ;;  %v3311_v16 = vld [vmem:[%s4872_s1 + $0xe4] ss:$16 sps:$4 sm:$0xff]  }
  0x53   : > { %1008 = vmatpush1.bf16.msra.mxu0 %v511_v22  ;;  %3159 = vmatpush1.bf16.msra.mxu1 %v511_v22  ;;  %v450_v22 = vld [vmem:[%s3601_s11 + $0x2e8] sm:$0xff]  ;;  %v1576_v26 = vsub.s32 0, %v3725_v21  ;;  %v1580_v38 = vsub.s32 1, %v3725_v21 }
  0x54   : > { %1009 = vmatprep.subr.bf16.mxu0 %v514_v24  ;;  %3144 = vmatprep.subr.bf16.mxu1 %v514_v24  ;;  %v1554_v24 = vld [vmem:[%s4876_s5] ss:$2 sm:$0x3]  ;;  %v532_v29 = vpack.c.bf16 %v452_v23, %v450_v22  ;;  %v478_v22 = vld [vmem:[%s3601_s11 + $0x3c8] sm:$0xff]  ;;  %v480_v23 = vld [vmem:[%s3601_s11 + $0x3d8] sm:$0xff] }
  0x55   : > { %v3741_v32 = vrot.slane %v1554_v24, %v1576_v26 }
  0x57   : > { %1010 = vmatpush1.bf16.msra.mxu0 %v513_v28  ;;  %3160 = vmatpush1.bf16.msra.mxu1 %v513_v28  ;;  %v529_v28 = vpack.c.bf16 %v447_v20, %v445_v19  ;;  %v473_v19 = vld [vmem:[%s3601_s11 + $0x3a0] sm:$0xff]  ;;  %v475_v20 = vld [vmem:[%s3601_s11 + $0x3b0] sm:$0xff] }
  0x58   : > { %1011 = vmatprep.subr.bf16.mxu0 %v516_v31  ;;  %3145 = vmatprep.subr.bf16.mxu1 %v516_v31  ;;  %v451_v31 = vld [vmem:[%s3601_s11 + $0x2f0] sm:$0xff] }
  0x59   : > { %1582 = vrot.lane.b32.xlu0 %v3741_v32, %s4882_s27  ;;  %v531_v37 = vpack.c.bf16 %v451_v31, %v449_v30  ;;  %v479_v30 = vld [vmem:[%s3601_s11 + $0x3d0] sm:$0xff]  ;;  %v482_v31 = vld [vmem:[%s3601_s11 + $0x3e8] sm:$0xff] }
  0x5b   : > { %1012 = vmatpush1.bf16.msra.mxu0 %v515_v36  ;;  %3161 = vmatpush1.bf16.msra.mxu1 %v515_v36  ;;  %v3358_v36 = vld [vmem:[%s4872_s1 + $0x160] ss:$16 sps:$4 sm:$0xff]  }
  0x5c   : > { %1194 = vmatprep.subr.bf16.mxu0 %v518_v40  ;;  %v453_v40 = vld [vmem:[%s3601_s11 + $0x300] sm:$0xff] }
  0x5e   : > { %1014 = vmatmul.mubr.bf16.vlgmr.msra.gmra.mrb[0].mxu0 %v3290_v39  ;;  %1104 = vmatmul.mubr.bf16.vlgmr.msra.gmra.mrb[0].mxu1 %v3344_v62  ;;  %v534_v39 = vpack.c.bf16 %v456_v34, %v454_v33  ;;  %v468_v62 = vld [vmem:[%s3601_s11 + $0x378] sm:$0xff]  ;;  %v3313_v34 = vld [vmem:[%s4872_s1 + $0xe0] ss:$16 sps:$4 sm:$0xff]  }
  0x5f   : > { %1023 = vmatprep.mubr.bf16.mxu0 %v3293_v41  ;;  %1195 = vmatpush1.bf16.msra.mxu0 %v517_v44  ;;  %v455_v41 = vld [vmem:[%s3601_s11 + $0x310] sm:$0xff]  ;;  %v3760_v44 = vrot.slane %v1554_v24, %v1580_v38  ;;  %v540_v2 = vpack.c.bf16 %v468_v62, %v466_v61  ;;  %v484_v33 = vld [vmem:[%s3601_s11 + $0x3f8] sm:$0xff] }
  0x60   : > { %1196 = vmatprep.subr.bf16.mxu0 %v520_v47  ;;  %1113 = vmatprep.mubr.bf16.mxu1 %v3350_v14  ;;  %v533_v47 = vpack.c.bf16 %v455_v41, %v453_v40  ;;  %v476_v14 = vld [vmem:[%s3601_s11 + $0x3b8] sm:$0xff]  ;;  %v3374_v24 = vld [vmem:[%s4872_s1 + $0x1c4] ss:$16 sps:$4 sm:$0xff]   ;;  %v3382_v41 = vld [vmem:[%s4872_s1 + $0x1e0] ss:$16 sps:$4 sm:$0xff]  }
  0x61   : > { %1584 = vrot.lane.b32.xlu0 %v3760_v44, %s4882_s27  ;;  %v3380_v40 = vld [vmem:[%s4872_s1 + $0x1e4] ss:$16 sps:$4 sm:$0xff]  }
  0x62   : > { %v2124_v61 = vld [vmem:[%s4873_s2 + $0x10] sm:$0xff] }
  0x63   : > { %1197 = vmatpush1.bf16.msra.mxu0 %v519_v50  ;;  %v459_v50 = vld [vmem:[%s3601_s11 + $0x330] sm:$0xff] }
  0x64   : > { %1198 = vmatprep.subr.bf16.mxu0 %v522_v54  ;;  %v3364_v54 = vld [vmem:[%s4872_s1 + $0x180] ss:$16 sps:$4 sm:$0xff]  }
  0x65   : > { %1786 = vrot.lane.b32.xlu0 %v3741_v32, %s4886_s20 }
  0x66   : > { %1024 = vmatmul.mubr.bf16.gmra.mrb[4].mxu0 %v3295_v53  ;;  %1114 = vmatmul.mubr.bf16.gmra.mrb[4].mxu1 %v3352_v15  ;;  %v3362_v53 = vld [vmem:[%s4872_s1 + $0x184] ss:$16 sps:$4 sm:$0xff]   ;;  %v3310_v15 = vld [vmem:[%s4872_s1 + $0xc0] ss:$16 sps:$4 sm:$0xff]  }
  0x67   : > { %1033 = vmatprep.mubr.bf16.mxu0 %v3296_v55  ;;  %1199 = vmatpush1.bf16.msra.mxu0 %v521_v56  ;;  %v535_v55 = vpack.c.bf16 %v459_v50, %v457_v49  ;;  %v2938_v56 = vld [vmem:[%s4876_s5 + $0x1] ss:$2 sm:$0x3]  ;;  %v3320_v49 = vld [vmem:[%s4872_s1 + $0x2c] ss:$16 sps:$4 sm:$0xff]  }
  0x68   : > { %1200 = vmatprep.subr.bf16.mxu0 %v524_v57  ;;  %1123 = vmatprep.mubr.bf16.mxu1 %v3356_v35  ;;  %v538_v57 = vpack.c.bf16 %v464_v52, %v462_v51  ;;  %v3785_v60 = vrot.slane %v2938_v56, %v1576_v26  ;;  %v543_v26 = vpack.c.bf16 %v475_v20, %v473_v19  ;;  %v3314_v35 = vld [vmem:[%s4872_s1 + $0x104] ss:$16 sps:$4 sm:$0xff]   ;;  %v3396_v51 = vld [vmem:[%s4872_s1 + $0x220] ss:$16 sps:$4 sm:$0xff]   ;;  %v3322_v52 = vld [vmem:[%s4872_s1 + $0x28] ss:$16 sps:$4 sm:$0xff]  }
  0x69   : > { %v3392_v50 = vld [vmem:[%s4872_s1 + $0x224] ss:$16 sps:$4 sm:$0xff]  }
  0x6a   : > { %1713 = vrot.lane.b32.xlu1 %v3785_v60, %s4884_s26 }
  0x6b   : > { %1201 = vmatpush1.bf16.msra.mxu0 %v523_v0  ;;  %v3308_v0 = vld [vmem:[%s4872_s1 + $0xc4] ss:$16 sps:$4 sm:$0xff]  }
  0x6c   : > { %1202 = vmatprep.subr.bf16.mxu0 %v526_v1  ;;  %v537_v1 = vpack.c.bf16 %v463_v59, %v461_v58  ;;  %v2123_v59 = vld [vmem:[%s4873_s2 + $0x8] sm:$0xff] }
  0x6e   : > { %1034 = vmatmul.mubr.bf16.gmra.mrb[8].mxu0 %v3298_v6  ;;  %1124 = vmatmul.mubr.bf16.gmra.mrb[8].mxu1 %v3358_v36  ;;  %v472_v6 = vld [vmem:[%s3601_s11 + $0x398] sm:$0xff] }
  0x6f   : > { %1043 = vmatprep.mubr.bf16.mxu0 %v3299_v7  ;;  %1203 = vmatpush1.bf16.msra.mxu0 %v525_v8  ;;  %v3368_v7 = vld [vmem:[%s4872_s1 + $0x1a4] ss:$16 sps:$4 sm:$0xff]   ;;  %v3370_v8 = vld [vmem:[%s4872_s1 + $0x1a0] ss:$16 sps:$4 sm:$0xff]   ;;  %v542_v10 = vpack.c.bf16 %v472_v6, %v470_v5  ;;  %v2125_v5 = vld [vmem:[%s4873_s2 + $0x18] sm:$0xff] }
  0x70   : > { %1204 = vmatprep.subr.bf16.mxu0 %v528_v9  ;;  %1133 = vmatprep.mubr.bf16.mxu1 %v3362_v53  ;;  %v539_v9 = vpack.c.bf16 %v467_v4, %v465_v3  ;;  %v3323_v53 = vld [vmem:[%s4872_s1 + $0x4c] ss:$16 sps:$4 sm:$0xff]   ;;  %v3334_v3 = vld [vmem:[%s4872_s1 + $0xa8] ss:$16 sps:$4 sm:$0xff]  }
  0x71   : > { %v3335_v4 = vld [vmem:[%s4872_s1 + $0xcc] ss:$16 sps:$4 sm:$0xff]   ;;  %v3337_v6 = vld [vmem:[%s4872_s1 + $0xc8] ss:$16 sps:$4 sm:$0xff]  }
  0x73   : > { %1205 = vmatpush1.bf16.msra.mxu0 %v527_v17  ;;  %v541_v17 = vpack.c.bf16 %v471_v12, %v469_v11  ;;  %v3347_v11 = vld [vmem:[%s4872_s1 + $0x12c] ss:$16 sps:$4 sm:$0xff]  }
  0x74   : > { %1206 = vmatprep.subr.bf16.mxu0 %v530_v18  ;;  %v544_v18 = vpack.c.bf16 %v476_v14, %v474_v13 }
  0x76   : > { %1044 = vmatmul.mubr.bf16.gmra.mrb[12].mxu0 %v3301_v25  ;;  %1134 = vmatmul.mubr.bf16.gmra.mrb[12].mxu1 %v3364_v54  ;;  %v3376_v25 = vld [vmem:[%s4872_s1 + $0x1c0] ss:$16 sps:$4 sm:$0xff]   ;;  %v3478_v54 = vmov 0.0  }
  0x77   : > { %1053 = vmatprep.mubr.bf16.mxu0 %v3302_v27  ;;  %1207 = vmatpush1.bf16.msra.mxu0 %v529_v28  ;;  %v3831_v27 = vrot.slane %v2938_v56, %v1580_v38  ;;  %v546_v28 = vpack.c.bf16 %v480_v23, %v478_v22  ;;  %v481_v38 = vld [vmem:[%s3601_s11 + $0x3e0] sm:$0xff]  ;;  %1412 = vst.msk [vmem:[#allocation2 + $0x60] sm:$0xff] %vm1407_vm0, %v3478_v54  ;;  %1408 = vst.msk [vmem:[#allocation2] sm:$0xff] %vm1407_vm0, %v3478_v54  ;;  %v3325_v56 = vld [vmem:[%s4872_s1 + $0x48] ss:$16 sps:$4 sm:$0xff]  }
  0x78   : > { %1208 = vmatprep.subr.bf16.mxu0 %v532_v29  ;;  %1143 = vmatprep.mubr.bf16.mxu1 %v3368_v7  ;;  %v477_v29 = vld [vmem:[%s3601_s11 + $0x3c0] sm:$0xff]  ;;  %1409 = vst.msk [vmem:[#allocation2 + $0x18] sm:$0xff] %vm1407_vm0, %v3478_v54  ;;  %1410 = vst.msk [vmem:[#allocation2 + $0x30] sm:$0xff] %vm1407_vm0, %v3478_v54  ;;  %v3338_v7 = vld [vmem:[%s4872_s1 + $0xec] ss:$16 sps:$4 sm:$0xff]  }
  0x79   : > { %1715 = vrot.lane.b32.xlu1 %v3831_v27, %s4884_s26  ;;  %v545_v36 = vpack.c.bf16 %v479_v30, %v477_v29  ;;  %s4892_s26 = smov 4   ;;  %1411 = vst.msk [vmem:[#allocation2 + $0x48] sm:$0xff] %vm1407_vm0, %v3478_v54  ;;  %1413 = vst.msk [vmem:[#allocation2 + $0x78] sm:$0xff] %vm1407_vm0, %v3478_v54 }
  0x7a   : > { %1876 = vrot.lane.b32.xlu0 %v3785_v60, %s4892_s26  ;;  %1414 = vst.msk [vmem:[#allocation2 + $0x90] sm:$0xff] %vm1407_vm0, %v3478_v54  ;;  %1415 = vst.msk [vmem:[#allocation2 + $0xa8] sm:$0xff] %vm1407_vm0, %v3478_v54 }
  0x7b   : > { %1209 = vmatpush1.bf16.msra.mxu0 %v531_v37  ;;  %v548_v37 = vpack.c.bf16 %v484_v33, %v482_v31  ;;  %1416 = vst.msk [vmem:[#allocation2 + $0xc0] sm:$0xff] %vm1407_vm0, %v3478_v54  ;;  %1417 = vst.msk [vmem:[#allocation2 + $0xd8] sm:$0xff] %vm1407_vm0, %v3478_v54 }
  0x7c   : > { %1210 = vmatprep.subr.bf16.mxu0 %v534_v39  ;;  %v483_v39 = vld [vmem:[%s3601_s11 + $0x3f0] sm:$0xff]  ;;  %1418 = vst.msk [vmem:[#allocation2 + $0xf0] sm:$0xff] %vm1407_vm0, %v3478_v54  ;;  %1419 = vst.msk [vmem:[#allocation2 + $0x108] sm:$0xff] %vm1407_vm0, %v3478_v54 }
  0x7d   : > { %1788 = vrot.lane.b32.xlu1 %v3760_v44, %s4886_s20  ;;  %v547_v42 = vpack.c.bf16 %v483_v39, %v481_v38  ;;  %1420 = vst.msk [vmem:[#allocation2 + $0x120] sm:$0xff] %vm1407_vm0, %v3478_v54  ;;  %1421 = vst.msk [vmem:[#allocation2 + $0x138] sm:$0xff] %vm1407_vm0, %v3478_v54  ;;  %v3365_v38 = vld [vmem:[%s4872_s1 + $0x18c] ss:$16 sps:$4 sm:$0xff]   ;;  %s4906_s20 = smov 76  }
  0x7e   : > { %1054 = vmatmul.mubr.bf16.gmra.mrb[16].mxu0 %v3304_v45  ;;  %1144 = vmatmul.mubr.bf16.gmra.mrb[16].mxu1 %v3370_v8  ;;  %v3319_v45 = vld [vmem:[%s4872_s1 + $0xc] ss:$16 sps:$4 sm:$0xff]   ;;  %1422 = vst.msk [vmem:[#allocation2 + $0x150] sm:$0xff] %vm1407_vm0, %v3478_v54  ;;  %1423 = vst.msk [vmem:[#allocation2 + $0x168] sm:$0xff] %vm1407_vm0, %v3478_v54  ;;  %v1643_v58 = vld [vmem:[#allocation2 + $0x60] sm:$0xff]  ;;  %vm2310_vm0 = vcmask 949248  }
  0x7f   : > { %1063 = vmatprep.mubr.bf16.mxu0 %v3305_v46  ;;  %1211 = vmatpush1.bf16.msra.mxu0 %v533_v47  ;;  %v3386_v46 = vld [vmem:[%s4872_s1 + $0x204] ss:$16 sps:$4 sm:$0xff]   ;;  %v3388_v47 = vld [vmem:[%s4872_s1 + $0x200] ss:$16 sps:$4 sm:$0xff]   ;;  %v3340_v8 = vld [vmem:[%s4872_s1 + $0xe8] ss:$16 sps:$4 sm:$0xff]  }
  0x80   : > { %1212 = vmatprep.subr.bf16.mxu0 %v536_v48  ;;  %1153 = vmatprep.mubr.bf16.mxu1 %v3374_v24  ;;  %v3317_v48 = vld [vmem:[%s4872_s1 + $0x8] ss:$16 sps:$4 sm:$0xff]   ;;  %v1565_v12 = vld [vmem:[#allocation2] sm:$0xff]  ;;  %v1569_v19 = vld [vmem:[#allocation2 + $0x30] sm:$0xff]  ;;  %1457 = vst.msk [vmem:[#allocation2 + $0x130] sm:$0xff] %vm1444_vm2, %v3478_v54 }
  0x81   : > { %1878 = vrot.lane.b32.xlu1 %v3831_v27, %s4892_s26  ;;  %1943 = vrot.lane.b32.xlu0 %v3741_v32, %s4888_s21  ;;  %v3328_v32 = vld [vmem:[%s4872_s1 + $0x68] ss:$16 sps:$4 sm:$0xff]   ;;  %v1647_v62 = vld [vmem:[#allocation2 + $0x90] sm:$0xff]  ;;  %s4900_s26 = smov 4   ;;  %1458 = vst.msk [vmem:[#allocation2 + $0x148] sm:$0xff] %vm1444_vm2, %v3478_v54  ;;  %1459 = vst.msk [vmem:[#allocation2 + $0x160] sm:$0xff] %vm1444_vm2, %v3478_v54 }
  0x82   : > { %v1567_v14 = vld [vmem:[#allocation2 + $0x18] sm:$0xff]  ;;  %v1571_v24 = vld [vmem:[#allocation2 + $0x48] sm:$0xff]  ;;  %1460 = vst.msk [vmem:[#allocation2 + $0x178] sm:$0xff] %vm1444_vm2, %v3478_v54  ;;  %1461 = vst.msk [vmem:[#allocation2 + $0x190] sm:$0xff] %vm1444_vm2, %v3478_v54 }
  0x83   : > { %1213 = vmatpush1.bf16.msra.mxu0 %v535_v55  ;;  %v3479_v55 = vmov 0   ;;  %1462 = vst.msk [vmem:[#allocation2 + $0x1a8] sm:$0xff] %vm1444_vm2, %v3478_v54  ;;  %1463 = vst.msk [vmem:[#allocation2 + $0x1c0] sm:$0xff] %vm1444_vm2, %v3478_v54  ;;  %v1698_v39 = vld [vmem:[#allocation2 + $0xd8] sm:$0xff] }
  0x84   : > { %1214 = vmatprep.subr.bf16.mxu0 %v538_v57  ;;  %3288 = vset.pattern.permute.xlu0 %v3479_v55  ;;  %v3326_v57 = vld [vmem:[%s4872_s1 + $0x6c] ss:$16 sps:$4 sm:$0xff]   ;;  %1464 = vst.msk [vmem:[#allocation2 + $0x1d8] sm:$0xff] %vm1444_vm2, %v3478_v54  ;;  %1465 = vst.msk [vmem:[#allocation2 + $0x1f0] sm:$0xff] %vm1444_vm2, %v3478_v54 }
  0x85   : > { %3289 = vset.pattern.permute.xlu1 %v3479_v55  ;;  %2063 = vrot.lane.b32.xlu0 %v3785_v60, %s4894_s25  ;;  %v1645_v60 = vld [vmem:[#allocation2 + $0x78] sm:$0xff]  ;;  %v1780_v31 = vld [vmem:[#allocation2 + $0x150] sm:$0xff]  ;;  %1466 = vst.msk [vmem:[#allocation2 + $0x208] sm:$0xff] %vm1444_vm2, %v3478_v54  ;;  %1467 = vst.msk [vmem:[#allocation2 + $0x220] sm:$0xff] %vm1444_vm2, %v3478_v54 }
  0x86   : > { %1064 = vmatmul.mubr.bf16.gmra.mrb[20].mxu0 %v3307_v63  ;;  %1154 = vmatmul.mubr.bf16.gmra.mrb[20].mxu1 %v3376_v25  ;;  %v3331_v63 = vld [vmem:[%s4872_s1 + $0x88] ss:$16 sps:$4 sm:$0xff]   ;;  %1468 = vst.msk [vmem:[#allocation2 + $0x238] sm:$0xff] %vm1444_vm2, %v3478_v54  ;;  %1469 = vst.msk [vmem:[#allocation2 + $0x250] sm:$0xff] %vm1444_vm2, %v3478_v54 }
  0x87   : > { %1073 = vmatprep.mubr.bf16.mxu0 %v3308_v0  ;;  %1215 = vmatpush1.bf16.msra.mxu0 %v537_v1  ;;  %v3332_v0 = vld [vmem:[%s4872_s1 + $0xac] ss:$16 sps:$4 sm:$0xff]   ;;  %1470 = vst.msk [vmem:[#allocation2 + $0x268] sm:$0xff] %vm1444_vm2, %v3478_v54  ;;  %1471 = vst.msk [vmem:[#allocation2 + $0x280] sm:$0xff] %vm1444_vm2, %v3478_v54  ;;  %v3379_v55 = vld [vmem:[%s4872_s1 + $0x1c8] ss:$16 sps:$4 sm:$0xff]  }
  0x88   : > { %1216 = vmatprep.subr.bf16.mxu0 %v540_v2  ;;  %1163 = vmatprep.mubr.bf16.mxu1 %v3380_v40  ;;  %v1649_v1 = vld [vmem:[#allocation2 + $0xa8] sm:$0xff]  ;;  %v2122_v2 = vld [vmem:[%s4873_s2] sm:$0xff]  ;;  %v1777_v25 = vld [vmem:[#allocation2 + $0x138] sm:$0xff]  ;;  %1472 = vst.msk [vmem:[#allocation2 + $0x298] sm:$0xff] %vm1444_vm2, %v3478_v54 }
  0x89   : > { %1945 = vrot.lane.b32.xlu1 %v3760_v44, %s4888_s21  ;;  %v3329_v44 = vld [vmem:[%s4872_s1 + $0x8c] ss:$16 sps:$4 sm:$0xff]   ;;  %1659 = vrot.lane.b32.xlu0 %v1643_v58, %s4890_s18  ;;  %1473 = vst.msk [vmem:[#allocation2 + $0x2b0] sm:$0xff] %vm1444_vm2, %v3478_v54  ;;  %1474 = vst.msk [vmem:[#allocation2 + $0x2c8] sm:$0xff] %vm1444_vm2, %v3478_v54 }
  0x8a   : > { %1475 = vst.msk [vmem:[#allocation2 + $0x2e0] sm:$0xff] %vm1444_vm2, %v3478_v54  ;;  %1476 = vst.msk [vmem:[#allocation2 + $0x2f8] sm:$0xff] %vm1444_vm2, %v3478_v54  ;;  %v3389_v58 = vld [vmem:[%s4872_s1 + $0x20c] ss:$16 sps:$4 sm:$0xff]  }
  0x8b   : > { %1217 = vmatpush1.bf16.msra.mxu0 %v539_v9  ;;  %v3341_v9 = vld [vmem:[%s4872_s1 + $0x10c] ss:$16 sps:$4 sm:$0xff]   ;;  %1477 = vst.msk [vmem:[#allocation2 + $0x310] sm:$0xff] %vm1444_vm2, %v3478_v54  ;;  %1478 = vst.msk [vmem:[#allocation2 + $0x328] sm:$0xff] %vm1444_vm2, %v3478_v54 }
  0x8c   : > { %1218 = vmatprep.subr.bf16.mxu0 %v542_v10  ;;  %v3343_v10 = vld [vmem:[%s4872_s1 + $0x108] ss:$16 sps:$4 sm:$0xff]   ;;  %1479 = vst.msk [vmem:[#allocation2 + $0x340] sm:$0xff] %vm1444_vm2, %v3478_v54  ;;  %1480 = vst.msk [vmem:[#allocation2 + $0x358] sm:$0xff] %vm1444_vm2, %v3478_v54  ;;  %vm2790_vm2 = vcmask 24576  }
  0x8d   : > { %2065 = vrot.lane.b32.xlu1 %v3831_v27, %s4894_s25  ;;  %1663 = vrot.lane.b32.xlu0 %v1645_v60, %s4890_s18  ;;  %v3359_v27 = vld [vmem:[%s4872_s1 + $0x16c] ss:$16 sps:$4 sm:$0xff]   ;;  %2285 = vst.msk [vmem:[#allocation3 + $0x8] sm:$0x1f] %vm2284_vm12, %v3478_v54 }
  0x8e   : > { %1074 = vmatmul.mubr.bf16.gmra.mrb[24].mxu0 %v3310_v15  ;;  %1164 = vmatmul.mubr.bf16.gmra.mrb[24].mxu1 %v3382_v41  ;;  %v1774_v41 = vld [vmem:[#allocation2 + $0x120] sm:$0xff] }
  0x8f   : > { %1083 = vmatprep.mubr.bf16.mxu0 %v3311_v16  ;;  %1219 = vmatpush1.bf16.msra.mxu0 %v541_v17  ;;  %v3349_v16 = vld [vmem:[%s4872_s1 + $0x128] ss:$16 sps:$4 sm:$0xff]   ;;  %v3353_v17 = vld [vmem:[%s4872_s1 + $0x14c] ss:$16 sps:$4 sm:$0xff]  }
  0x90   : > { %1220 = vmatprep.subr.bf16.mxu0 %v544_v18  ;;  %1173 = vmatprep.mubr.bf16.mxu1 %v3386_v46  ;;  %v1700_v46 = vld [vmem:[#allocation2 + $0xf0] sm:$0xff] }
  0x91   : > { %2133 = vperm.xlu1 %3289, %v2123_v59   ;;  %1667 = vrot.lane.b32.xlu0 %v1647_v62, %s4890_s18  ;;  %v3391_v59 = vld [vmem:[%s4872_s1 + $0x208] ss:$16 sps:$4 sm:$0xff]  }
  0x93   : > { %1221 = vmatpush1.bf16.msra.mxu0 %v543_v26  ;;  %v3355_v26 = vld [vmem:[%s4872_s1 + $0x148] ss:$16 sps:$4 sm:$0xff]  }
  0x94   : > { %1222 = vmatprep.subr.bf16.mxu0 %v546_v28 }
  0x95   : > { %2138 = vperm.xlu1 %3289, %v2124_v61   ;;  %1671 = vrot.lane.b32.xlu0 %v1649_v1, %s4890_s18  ;;  %s3483_s18 = smov 80  }
  0x96   : > { %1084 = vmatmul.mubr.bf16.gmra.mrb[28].mxu0 %v3313_v34  ;;  %1174 = vmatmul.mubr.bf16.gmra.mrb[28].mxu1 %v3388_v47 }
  0x97   : > { %1093 = vmatprep.mubr.bf16.mxu0 %v3314_v35  ;;  %1223 = vmatpush1.bf16.msra.mxu0 %v545_v36  ;;  %v1696_v35 = vld [vmem:[#allocation2 + $0xc0] sm:$0xff] }
  0x98   : > { %1224 = vmatprep.subr.bf16.mxu0 %v548_v37  ;;  %1183 = vmatprep.mubr.bf16.mxu1 %v3392_v50  ;;  %v3361_v37 = vld [vmem:[%s4872_s1 + $0x168] ss:$16 sps:$4 sm:$0xff]  }
  0x99   : > { %2128 = vperm.xlu0 %3288, %v2122_v2   ;;  %v3373_v50 = vld [vmem:[%s4872_s1 + $0x1a8] ss:$16 sps:$4 sm:$0xff]  }
  0x9b   : > { %1225 = vmatpush1.bf16.msra.mxu0 %v547_v42 }
  0x9d   : > { %2143 = vperm.xlu0 %3288, %v2125_v5  }
  0x9e   : > { %1094 = vmatmul.mubr.bf16.gmra.mrb[32].mxu0 %v3316_v43  ;;  %1184 = vmatmul.mubr.bf16.gmra.mrb[32].mxu1 %v3396_v51  ;;  %v3367_v43 = vld [vmem:[%s4872_s1 + $0x188] ss:$16 sps:$4 sm:$0xff]   ;;  %v3377_v51 = vld [vmem:[%s4872_s1 + $0x1cc] ss:$16 sps:$4 sm:$0xff]  }
  0x9f   : > { %1226 = vmatprep.mubr.bf16.mxu0 %v3319_v45  ;;  %2237 = vmatprep.mubr.f32.mxu1 %v3478_v54  ;;  %v3371_v45 = vld [vmem:[%s4872_s1 + $0x1ac] ss:$16 sps:$4 sm:$0xff]  }
  0xa6   : > { %1227 = vmatmul.mubr.bf16.vlgmr.msra.gmra.mrb[0].mxu0 %v3317_v48  ;;  %v1702_v48 = vld [vmem:[#allocation2 + $0x108] sm:$0xff] }
  0xa7   : > { %1236 = vmatprep.mubr.bf16.mxu0 %v3320_v49 }
  0xae   : > { %1237 = vmatmul.mubr.bf16.gmra.mrb[4].mxu0 %v3322_v52  ;;  %v1783_v52 = vld [vmem:[#allocation2 + $0x168] sm:$0xff] }
  0xaf   : > { %1246 = vmatprep.mubr.bf16.mxu0 %v3323_v53 }
  0xb6   : > { %1247 = vmatmul.mubr.bf16.gmra.mrb[8].mxu0 %v3325_v56  ;;  %v3383_v56 = vld [vmem:[%s4872_s1 + $0x1ec] ss:$16 sps:$4 sm:$0xff]  }
  0xb7   : > { %1256 = vmatprep.mubr.bf16.mxu0 %v3326_v57  ;;  %v3385_v57 = vld [vmem:[%s4872_s1 + $0x1e8] ss:$16 sps:$4 sm:$0xff]  }
  0xbe   : > { %1257 = vmatmul.mubr.bf16.gmra.mrb[12].mxu0 %v3328_v32  ;;  %v3394_v32 = vld [vmem:[%s4872_s1 + $0x22c] ss:$16 sps:$4 sm:$0xff]  }
  0xbf   : > { %1266 = vmatprep.mubr.bf16.mxu0 %v3329_v44  ;;  %v3397_v44 = vld [vmem:[%s4872_s1 + $0x228] ss:$16 sps:$4 sm:$0xff]  }
  0xc6   : > { %1267 = vmatmul.mubr.bf16.gmra.mrb[16].mxu0 %v3331_v63 }
  0xc7   : > { %1276 = vmatprep.mubr.bf16.mxu0 %v3332_v0 }
  0xcb   : > { %v1583_v13 = vpop.permute.xlu0 %1582 }
  0xcc   : > { %v1590_v15 = vmul.f32 %v1583_v13, %v1565_v12  ;;  %v1592_v18 = vmul.f32 %v1583_v13, %v1567_v14  ;;  %v1594_v23 = vmul.f32 %v1583_v13, %v1569_v19  ;;  %v1596_v28 = vmul.f32 %v1583_v13, %v1571_v24 }
  0xce   : > { %1277 = vmatmul.mubr.bf16.gmra.mrb[20].mxu0 %v3334_v3  ;;  %1606 = vrot.lane.b32.xlu0 %v1590_v15, %s4894_s25 }
  0xcf   : > { %1286 = vmatprep.mubr.bf16.mxu0 %v3335_v4 }
  0xd2   : > { %1610 = vrot.lane.b32.xlu0 %v1592_v18, %s4894_s25 }
  0xd3   : > { %v1585_v20 = vpop.permute.xlu0 %1584 }
  0xd4   : > { %v3996_v22 = vsel %vm1586_vm1, %v1583_v13, %v1585_v20 }
  0xd6   : > { %1287 = vmatmul.mubr.bf16.gmra.mrb[24].mxu0 %v3337_v6  ;;  %1614 = vrot.lane.b32.xlu0 %v1594_v23, %s4894_s25 }
  0xd7   : > { %1296 = vmatprep.mubr.bf16.mxu0 %v3338_v7  ;;  %v4006_v29 = vpop.permute.xlu0 %1786 }
  0xd8   : > { %v1798_v30 = vmul.f32 %v4006_v29, %v1777_v25  ;;  %v1801_v34 = vmul.f32 %v4006_v29, %v1780_v31  ;;  %v1795_v42 = vmul.f32 %v4006_v29, %v1774_v41  ;;  %v1804_v53 = vmul.f32 %v4006_v29, %v1783_v52 }
  0xda   : > { %1825 = vrot.lane.b32.xlu1 %v1798_v30, %s4900_s26  ;;  %1618 = vrot.lane.b32.xlu0 %v1596_v28, %s4894_s25  ;;  %s4903_s25 = smov 48  }
  0xdc   : > { %v4009_v33 = vpop.permute.xlu1 %1713 }
  0xdd   : > { %v1721_v36 = vmul.f32 %v4009_v33, %v1696_v35  ;;  %v1723_v40 = vmul.f32 %v4009_v33, %v1698_v39  ;;  %v1725_v47 = vmul.f32 %v4009_v33, %v1700_v46  ;;  %v1727_v49 = vmul.f32 %v4009_v33, %v1702_v48 }
  0xde   : > { %1297 = vmatmul.mubr.bf16.gmra.mrb[28].mxu0 %v3340_v8  ;;  %1831 = vrot.lane.b32.xlu1 %v1801_v34, %s4900_s26 }
  0xdf   : > { %1306 = vmatprep.mubr.bf16.mxu0 %v3341_v9  ;;  %1737 = vrot.lane.b32.xlu0 %v1721_v36, %s4901_s12 }
  0xe3   : > { %1741 = vrot.lane.b32.xlu0 %v1723_v40, %s4901_s12 }
  0xe6   : > { %1307 = vmatmul.mubr.bf16.gmra.mrb[32].mxu0 %v3343_v10 }
  0xe7   : > { %1316 = vmatprep.mubr.bf16.mxu0 %v3347_v11  ;;  %1819 = vrot.lane.b32.xlu0 %v1795_v42, %s4900_s26 }
  0xeb   : > { %1745 = vrot.lane.b32.xlu0 %v1725_v47, %s4901_s12 }
  0xee   : > { %1317 = vmatmul.mubr.bf16.gmra.mrb[36].mxu0 %v3349_v16 }
  0xef   : > { %1326 = vmatprep.mubr.bf16.mxu0 %v3353_v17  ;;  %1749 = vrot.lane.b32.xlu0 %v1727_v49, %s4901_s12 }
  0xf3   : > { %1837 = vrot.lane.b32.xlu0 %v1804_v53, %s4900_s26 }
  0xf6   : > { %1327 = vmatmul.mubr.bf16.gmra.mrb[40].mxu0 %v3355_v26 }
  0xf7   : > { %1336 = vmatprep.mubr.bf16.mxu0 %v3359_v27 }
  0xfe   : > { %1337 = vmatmul.mubr.bf16.gmra.mrb[44].mxu0 %v3361_v37 }
  0xff   : > { %1346 = vmatprep.mubr.bf16.mxu0 %v3365_v38 }
 0x106   : > { %1347 = vmatmul.mubr.bf16.gmra.mrb[48].mxu0 %v3367_v43 }
 0x107   : > { %1356 = vmatprep.mubr.bf16.mxu0 %v3371_v45 }
 0x10e   : > { %1357 = vmatmul.mubr.bf16.gmra.mrb[52].mxu0 %v3373_v50 }
 0x10f   : > { %1366 = vmatprep.mubr.bf16.mxu0 %v3377_v51 }
 0x116   : > { %1367 = vmatmul.mubr.bf16.gmra.mrb[56].mxu0 %v3379_v55 }
 0x117   : > { %1376 = vmatprep.mubr.bf16.mxu0 %v3383_v56 }
 0x11e   : > { %1377 = vmatmul.mubr.bf16.gmra.mrb[60].mxu0 %v3385_v57 }
 0x11f   : > { %1386 = vmatprep.mubr.bf16.mxu0 %v3389_v58 }
 0x126   : > { %1387 = vmatmul.mubr.bf16.gmra.mrb[64].mxu0 %v3391_v59  ;;  %v1716_v59 = vpop.permute.xlu1 %1715 }
 0x127   : > { %1396 = vmatprep.mubr.bf16.mxu0 %v3394_v32 }
 0x12e   : > { %1397 = vmatmul.mubr.bf16.gmra.mrb[68].mxu0 %v3397_v44 }
 0x131   : > { %v4114_v60 = vpop.f32.mrb[0].mxu1 }
 0x132   : > { %v4116_v61 = vpop.f32.mrb[1].mxu1 }
 0x133   : > { %v4118_v62 = vpop.f32.mrb[2].mxu1 }
 0x134   : > { %v4120_v63 = vpop.f32.mrb[3].mxu1 }
 0x139   : > { %v4122_v0 = vpop.f32.mrb[4].mxu1 }
 0x13a   : > { %v4124_v1 = vpop.f32.mrb[5].mxu1 }
 0x13b   : > { %v4126_v2 = vpop.f32.mrb[6].mxu1 }
 0x13c   : > { %v4128_v3 = vpop.f32.mrb[7].mxu1 }
 0x141   : > { %v4130_v4 = vpop.f32.mrb[8].mxu1 }
 0x142   : > { %v4132_v5 = vpop.f32.mrb[9].mxu1 }
 0x143   : > { %v4134_v6 = vpop.f32.mrb[10].mxu1 }
 0x144   : > { %v4136_v7 = vpop.f32.mrb[11].mxu1 }
 0x149   : > { %v4138_v8 = vpop.f32.mrb[12].mxu1 }
 0x14a   : > { %v4140_v9 = vpop.f32.mrb[13].mxu1 }
 0x14b   : > { %v4142_v10 = vpop.f32.mrb[14].mxu1 }
 0x14c   : > { %v4144_v11 = vpop.f32.mrb[15].mxu1 }
 0x151   : > { %v4146_v12 = vpop.f32.mrb[16].mxu1 }
 0x152   : > { %v4148_v13 = vpop.f32.mrb[17].mxu1 }
 0x153   : > { %v4150_v14 = vpop.f32.mrb[18].mxu1 }
 0x154   : > { %v4152_v15 = vpop.f32.mrb[19].mxu1 }
 0x159   : > { %v4154_v16 = vpop.f32.mrb[20].mxu1 }
 0x15a   : > { %v4156_v17 = vpop.f32.mrb[21].mxu1 }
 0x15b   : > { %v4158_v18 = vpop.f32.mrb[22].mxu1 }
 0x15c   : > { %v4160_v19 = vpop.f32.mrb[23].mxu1 }
 0x161   : > { %v4162_v20 = vpop.f32.mrb[24].mxu1 }
 0x162   : > { %v4164_v23 = vpop.f32.mrb[25].mxu1 }
 0x163   : > { %v4166_v24 = vpop.f32.mrb[26].mxu1 }
 0x164   : > { %v4168_v25 = vpop.f32.mrb[27].mxu1 }
 0x169   : > { %v4170_v26 = vpop.f32.mrb[28].mxu1 }
 0x16a   : > { %v4172_v27 = vpop.f32.mrb[29].mxu1 }
 0x16b   : > { %v4174_v28 = vpop.f32.mrb[30].mxu1 }
 0x16c   : > { %v4177_v35 = vpop.f32.mrb[31].mxu1 }
 0x171   : > { %v4181_v39 = vpop.f32.mrb[32].mxu1 }
 0x172   : > { %v4183_v40 = vpop.f32.mrb[33].mxu1 }
 0x173   : > { %v4186_v41 = vpop.f32.mrb[34].mxu1 }
 0x174   : > { %v4189_v46 = vpop.f32.mrb[35].mxu1 }
 0x179   : > { %v1228_v30 = vpop.f32.mrb[0].mxu0 }
 0x17a   : > { %v1230_v31 = vpop.f32.mrb[1].mxu0  ;;  %v1591_v34 = vmul.f32 %v3996_v22, %v1228_v30 }
 0x17b   : > { %v1232_v36 = vpop.f32.mrb[2].mxu0 }
 0x17c   : > { %v1234_v37 = vpop.f32.mrb[3].mxu0  ;;  %1608 = vrot.lane.b32.xlu1 %v1591_v34, %s4902_s0  ;;  %v1593_v38 = vmul.f32 %v3996_v22, %v1232_v36 }
 0x180   : > { %1612 = vrot.lane.b32.xlu1 %v1593_v38, %s4902_s0 }
 0x181   : > { %v1238_v42 = vpop.f32.mrb[4].mxu0 }
 0x182   : > { %v1240_v43 = vpop.f32.mrb[5].mxu0  ;;  %v1595_v45 = vmul.f32 %v3996_v22, %v1238_v42 }
 0x183   : > { %v1242_v47 = vpop.f32.mrb[6].mxu0 }
 0x184   : > { %v1244_v48 = vpop.f32.mrb[7].mxu0  ;;  %1616 = vrot.lane.b32.xlu1 %v1595_v45, %s4902_s0  ;;  %v1597_v49 = vmul.f32 %v3996_v22, %v1242_v47  ;;  %v1718_v22 = vsel %vm1717_vm4, %v4009_v33, %v1716_v59  ;;  %v1789_v47 = vpop.permute.xlu1 %1788 }
 0x188   : > { %1620 = vrot.lane.b32.xlu1 %v1597_v49, %s4902_s0  ;;  %v1791_v49 = vsel %vm1790_vm5, %v4006_v29, %v1789_v47  ;;  %s350_s0 = sand.u32 1, %s3464_s14  }
 0x189   : > { %v1248_v50 = vpop.f32.mrb[8].mxu0  ;;  %s2793_s30 = scalar_lea.sflag [#allocation5], %s350_s0 }
 0x18a   : > { %v1250_v51 = vpop.f32.mrb[9].mxu0 }
 0x18b   : > { %v1252_v52 = vpop.f32.mrb[10].mxu0 }
 0x18c   : > { %v1254_v53 = vpop.f32.mrb[11].mxu0  ;;  %1661 = vrot.lane.b32.xlu1 %v1248_v50, %s4903_s25 }
 0x190   : > { %1665 = vrot.lane.b32.xlu1 %v1252_v52, %s4903_s25 }
 0x191   : > { %v1258_v55 = vpop.f32.mrb[12].mxu0 }
 0x192   : > { %v1260_v56 = vpop.f32.mrb[13].mxu0 }
 0x193   : > { %v1262_v57 = vpop.f32.mrb[14].mxu0 }
 0x194   : > { %v1264_v58 = vpop.f32.mrb[15].mxu0  ;;  %1669 = vrot.lane.b32.xlu1 %v1258_v55, %s4903_s25  ;;  %v4209_v55 = vpop.permute.xlu0 %1876 }
 0x198   : > { %1673 = vrot.lane.b32.xlu1 %v1262_v57, %s4903_s25  ;;  %s2943_s25 = sshll.u32 %s3566_s17, 4  ;;  %s3489_s17 = smov [#allocation4]  }
 0x199   : > { %v1268_v32 = vpop.f32.mrb[16].mxu0  ;;  %s4829_s21 = scalar_lea.hbm %s4881_s10, %s2943_s25  ;;  %s3414_s27 = sshll.u32 %s3489_s17, 4  ;;  %s3415_s27 = int_to_ptr.vmem [resolvable:$false] %s3414_s27 }
 0x19a   : > { %v1270_v44 = vpop.f32.mrb[17].mxu0  ;;  %v1722_v30 = vmul.f32 %v1718_v22, %v1268_v32  ;;  %s3416_s29 = scalar_lea.vmem %s3415_s27, 32 }
 0x19b   : > { %v1272_v31 = vpop.f32.mrb[18].mxu0  ;;  %v4213_v44 = vpop.permute.xlu0 %1943 }
 0x19c   : > { %v1274_v34 = vpop.f32.mrb[19].mxu0  ;;  %1739 = vrot.lane.b32.xlu1 %v1722_v30, %s4901_s12  ;;  %v1724_v36 = vmul.f32 %v1718_v22, %v1272_v31 }
 0x1a0   : > { %1743 = vrot.lane.b32.xlu1 %v1724_v36, %s4901_s12 }
 0x1a1   : > { %v1278_v37 = vpop.f32.mrb[20].mxu0 }
 0x1a2   : > { %v1280_v38 = vpop.f32.mrb[21].mxu0  ;;  %v1726_v42 = vmul.f32 %v1718_v22, %v1278_v37 }
 0x1a3   : > { %v1282_v43 = vpop.f32.mrb[22].mxu0  ;;  %v4222_v38 = vpop.permute.xlu0 %2063 }
 0x1a4   : > { %v1284_v45 = vpop.f32.mrb[23].mxu0  ;;  %1747 = vrot.lane.b32.xlu1 %v1726_v42, %s4901_s12  ;;  %v1728_v33 = vmul.f32 %v1718_v22, %v1282_v43 }
 0x1a8   : > { %1751 = vrot.lane.b32.xlu1 %v1728_v33, %s4901_s12  ;;  %s4905_s12 = smov 84  }
 0x1a9   : > { %v1288_v48 = vpop.f32.mrb[24].mxu0 }
 0x1aa   : > { %v1290_v50 = vpop.f32.mrb[25].mxu0  ;;  %v1796_v51 = vmul.f32 %v1791_v49, %v1288_v48 }
 0x1ab   : > { %1507 = vst.msk [vmem:[#allocation2 + $0x130] sm:$0xff] %vm1482_vm3, %v1290_v50  ;;  %v1292_v52 = vpop.f32.mrb[26].mxu0 }
 0x1ac   : > { %v1294_v53 = vpop.f32.mrb[27].mxu0  ;;  %1821 = vrot.lane.b32.xlu0 %v1796_v51, %s4900_s26  ;;  %v1799_v56 = vmul.f32 %v1791_v49, %v1292_v52  ;;  %v4229_v51 = vpop.permute.xlu0 %1659 }
 0x1ad   : > { %1509 = vst.msk [vmem:[#allocation2 + $0x148] sm:$0xff] %vm1482_vm3, %v1294_v53 }
 0x1b0   : > { %1827 = vrot.lane.b32.xlu0 %v1799_v56, %s4900_s26 }
 0x1b1   : > { %v1298_v57 = vpop.f32.mrb[28].mxu0 }
 0x1b2   : > { %v1300_v58 = vpop.f32.mrb[29].mxu0  ;;  %v1776_v59 = vld [vmem:[#allocation2 + $0x130] sm:$0xff]  ;;  %v1802_v22 = vmul.f32 %v1791_v49, %v1298_v57 }
 0x1b3   : > { %1511 = vst.msk [vmem:[#allocation2 + $0x160] sm:$0xff] %vm1482_vm3, %v1300_v58  ;;  %v1302_v29 = vpop.f32.mrb[30].mxu0  ;;  %v1797_v32 = vmul.f32 %v1789_v47, %v1776_v59 }
 0x1b4   : > { %v1304_v30 = vpop.f32.mrb[31].mxu0  ;;  %v1779_v31 = vld [vmem:[#allocation2 + $0x148] sm:$0xff]  ;;  %1833 = vrot.lane.b32.xlu0 %v1802_v22, %s4900_s26  ;;  %v1805_v34 = vmul.f32 %v1791_v49, %v1302_v29  ;;  %v1879_v29 = vpop.permute.xlu1 %1878 }
 0x1b5   : > { %1513 = vst.msk [vmem:[#allocation2 + $0x178] sm:$0xff] %vm1482_vm3, %v1304_v30  ;;  %1823 = vrot.lane.b32.xlu1 %v1797_v32, %s4900_s26  ;;  %v1800_v36 = vmul.f32 %v1789_v47, %v1779_v31  ;;  %v4241_v32 = vpop.permute.xlu0 %1663 }
 0x1b8   : > { %1839 = vrot.lane.b32.xlu0 %v1805_v34, %s4900_s26  ;;  %v1946_v34 = vpop.permute.xlu1 %1945 }
 0x1b9   : > { %1829 = vrot.lane.b32.xlu1 %v1800_v36, %s4900_s26  ;;  %v4220_v37 = vpop.f32.mrb[32].mxu0 }
 0x1ba   : > { %v1310_v42 = vpop.f32.mrb[33].mxu0  ;;  %v1782_v43 = vld [vmem:[#allocation2 + $0x160] sm:$0xff] }
 0x1bb   : > { %1515 = vst.msk [vmem:[#allocation2 + $0x190] sm:$0xff] %vm1482_vm3, %v1310_v42  ;;  %v4225_v45 = vpop.f32.mrb[34].mxu0  ;;  %v1803_v33 = vmul.f32 %v1789_v47, %v1782_v43 }
 0x1bc   : > { %v1314_v48 = vpop.f32.mrb[35].mxu0  ;;  %v1785_v50 = vld [vmem:[#allocation2 + $0x178] sm:$0xff] }
 0x1bd   : > { %1517 = vst.msk [vmem:[#allocation2 + $0x1a8] sm:$0xff] %vm1482_vm3, %v1314_v48  ;;  %1835 = vrot.lane.b32.xlu1 %v1803_v33, %s4900_s26  ;;  %v1806_v49 = vmul.f32 %v1789_v47, %v1785_v50 }
 0x1c1   : > { %1841 = vrot.lane.b32.xlu1 %v1806_v49, %s4900_s26  ;;  %v1318_v52 = vpop.f32.mrb[36].mxu0  ;;  %s4904_s26 = smov 124  }
 0x1c2   : > { %v4233_v53 = vadd.f32 %v1318_v52, %v4114_v60  ;;  %v1320_v56 = vpop.f32.mrb[37].mxu0  ;;  %v1880_v52 = vsel %vm1843_vm6, %v4209_v55, %v1879_v29 }
 0x1c3   : > { %v1321_v57 = vadd.f32 %v1320_v56, %v4116_v61  ;;  %v1322_v58 = vpop.f32.mrb[38].mxu0 }
 0x1c4   : > { %v4237_v59 = vadd.f32 %v1322_v58, %v4118_v62  ;;  %v1324_v22 = vpop.f32.mrb[39].mxu0  ;;  %v4246_v62 = vpop.permute.xlu0 %1667 }
 0x1c5   : > { %1519 = vst.msk [vmem:[#allocation2 + $0x1c0] sm:$0xff] %vm1482_vm3, %v1321_v57  ;;  %v1325_v47 = vadd.f32 %v1324_v22, %v4120_v63 }
 0x1c7   : > { %1521 = vst.msk [vmem:[#allocation2 + $0x1d8] sm:$0xff] %vm1482_vm3, %v1325_v47 }
 0x1c8   : > { %v4257_v48 = vpop.permute.xlu0 %1671 }
 0x1c9   : > { %v1328_v30 = vpop.f32.mrb[40].mxu0 }
 0x1ca   : > { %v1329_v60 = vadd.f32 %v1328_v30, %v4122_v0  ;;  %v1330_v31 = vpop.f32.mrb[41].mxu0 }
 0x1cb   : > { %v1331_v61 = vadd.f32 %v1330_v31, %v4124_v1  ;;  %v1332_v36 = vpop.f32.mrb[42].mxu0  ;;  %v4255_v1 = vpop.permute.xlu1 %2065 }
 0x1cc   : > { %v1333_v42 = vadd.f32 %v1332_v36, %v4126_v2  ;;  %v1334_v43 = vpop.f32.mrb[43].mxu0  ;;  %v1883_v33 = vmul.f32 %v4209_v55, %v1329_v60  ;;  %v4270_v29 = vpop.permute.xlu0 %2128 }
 0x1cd   : > { %1523 = vst.msk [vmem:[#allocation2 + $0x1f0] sm:$0xff] %vm1482_vm3, %v1331_v61  ;;  %v1335_v63 = vadd.f32 %v1334_v43, %v4128_v3 }
 0x1ce   : > { %1899 = vrot.lane.b32.xlu0 %v1883_v33, %s4904_s26  ;;  %v1885_v0 = vmul.f32 %v4209_v55, %v1333_v42 }
 0x1cf   : > { %1525 = vst.msk [vmem:[#allocation2 + $0x208] sm:$0xff] %vm1482_vm3, %v1335_v63 }
 0x1d1   : > { %v1338_v50 = vpop.f32.mrb[44].mxu0 }
 0x1d2   : > { %v1339_v2 = vadd.f32 %v1338_v50, %v4130_v4  ;;  %v1340_v49 = vpop.f32.mrb[45].mxu0  ;;  %1903 = vrot.lane.b32.xlu0 %v1885_v0, %s4904_s26  ;;  %v4267_v4 = vpop.permute.xlu1 %2133 }
 0x1d3   : > { %v1341_v3 = vadd.f32 %v1340_v49, %v4132_v5  ;;  %v1342_v56 = vpop.f32.mrb[46].mxu0  ;;  %v4279_v0 = vpop.permute.xlu0 %2143 }
 0x1d4   : > { %v1343_v57 = vadd.f32 %v1342_v56, %v4134_v6  ;;  %v1344_v58 = vpop.f32.mrb[47].mxu0  ;;  %v1869_v22 = vld [vmem:[#allocation2 + $0x1f0] sm:$0xff] }
 0x1d5   : > { %1527 = vst.msk [vmem:[#allocation2 + $0x220] sm:$0xff] %vm1482_vm3, %v1341_v3  ;;  %v1345_v47 = vadd.f32 %v1344_v58, %v4136_v7  ;;  %v1884_v30 = vmul.f32 %v1880_v52, %v1869_v22  ;;  %v1947_v58 = vsel %vm1753_vm7, %v4213_v44, %v1946_v34 }
 0x1d6   : > { %v1871_v60 = vld [vmem:[#allocation2 + $0x208] sm:$0xff]  ;;  %v4277_v63 = vpop.permute.xlu1 %2138 }
 0x1d7   : > { %1529 = vst.msk [vmem:[#allocation2 + $0x238] sm:$0xff] %vm1482_vm3, %v1345_v47  ;;  %1901 = vrot.lane.b32.xlu1 %v1884_v30, %s4904_s26  ;;  %v1886_v31 = vmul.f32 %v1880_v52, %v1871_v60  ;;  %v1607_v47 = vpop.permute.xlu0 %1606 }
 0x1d9   : > { %v1348_v5 = vpop.f32.mrb[48].mxu0 }
 0x1da   : > { %v1349_v6 = vadd.f32 %v1348_v5, %v4138_v8  ;;  %v1350_v61 = vpop.f32.mrb[49].mxu0  ;;  %v1887_v8 = vmul.f32 %v4209_v55, %v1339_v2  ;;  %v4291_v2 = vpop.permute.xlu1 %1825 }
 0x1db   : > { %v1351_v36 = vadd.f32 %v1350_v61, %v4140_v9  ;;  %v1352_v42 = vpop.f32.mrb[50].mxu0  ;;  %1905 = vrot.lane.b32.xlu1 %v1886_v31, %s4904_s26  ;;  %v1611_v61 = vpop.permute.xlu0 %1610 }
 0x1dc   : > { %v1353_v7 = vadd.f32 %v1352_v42, %v4142_v10  ;;  %v1354_v43 = vpop.f32.mrb[51].mxu0  ;;  %v1873_v33 = vld [vmem:[#allocation2 + $0x220] sm:$0xff]  ;;  %v1889_v10 = vmul.f32 %v4209_v55, %v1343_v57 }
 0x1dd   : > { %1531 = vst.msk [vmem:[#allocation2 + $0x250] sm:$0xff] %vm1482_vm3, %v1351_v36  ;;  %v1355_v50 = vadd.f32 %v1354_v43, %v4144_v11  ;;  %v1888_v49 = vmul.f32 %v1880_v52, %v1873_v33 }
 0x1de   : > { %v1875_v3 = vld [vmem:[#allocation2 + $0x238] sm:$0xff]  ;;  %v1952_v36 = vmul.f32 %v4213_v44, %v1353_v7 }
 0x1df   : > { %1533 = vst.msk [vmem:[#allocation2 + $0x268] sm:$0xff] %vm1482_vm3, %v1355_v50  ;;  %1907 = vrot.lane.b32.xlu1 %v1887_v8, %s4904_s26  ;;  %1909 = vrot.lane.b32.xlu0 %v1888_v49, %s4904_s26  ;;  %v1890_v56 = vmul.f32 %v1880_v52, %v1875_v3 }
 0x1e1   : > { %v1358_v9 = vpop.f32.mrb[52].mxu0 }
 0x1e2   : > { %v1359_v11 = vadd.f32 %v1358_v9, %v4146_v12  ;;  %v1360_v22 = vpop.f32.mrb[53].mxu0  ;;  %v1950_v12 = vmul.f32 %v4213_v44, %v1349_v6 }
 0x1e3   : > { %v1361_v30 = vadd.f32 %v1360_v22, %v4148_v13  ;;  %v1362_v60 = vpop.f32.mrb[54].mxu0  ;;  %1911 = vrot.lane.b32.xlu1 %v1889_v10, %s4904_s26  ;;  %1913 = vrot.lane.b32.xlu0 %v1890_v56, %s4904_s26  ;;  %v4303_v13 = vpop.permute.xlu1 %1831  ;;  %s3484_s26 = smov 127  }
 0x1e4   : > { %v1363_v5 = vadd.f32 %v1362_v60, %v4150_v14  ;;  %v1364_v55 = vpop.f32.mrb[55].mxu0  ;;  %v1936_v52 = vld [vmem:[#allocation2 + $0x250] sm:$0xff]  ;;  %v1954_v7 = vmul.f32 %v4213_v44, %v1359_v11 }
 0x1e5   : > { %1535 = vst.msk [vmem:[#allocation2 + $0x280] sm:$0xff] %vm1482_vm3, %v1361_v30  ;;  %v1365_v34 = vadd.f32 %v1364_v55, %v4152_v15  ;;  %v1951_v57 = vmul.f32 %v1947_v58, %v1936_v52 }
 0x1e6   : > { %v1938_v31 = vld [vmem:[#allocation2 + $0x268] sm:$0xff] }
 0x1e7   : > { %1537 = vst.msk [vmem:[#allocation2 + $0x298] sm:$0xff] %vm1482_vm3, %v1365_v34  ;;  %1966 = vrot.lane.b32.xlu1 %v1950_v12, %s4905_s12  ;;  %1968 = vrot.lane.b32.xlu0 %v1951_v57, %s4905_s12  ;;  %v1953_v42 = vmul.f32 %v1947_v58, %v1938_v31 }
 0x1e9   : > { %v1368_v14 = vpop.f32.mrb[56].mxu0 }
 0x1ea   : > { %v1369_v43 = vadd.f32 %v1368_v14, %v4154_v16  ;;  %v1370_v15 = vpop.f32.mrb[57].mxu0 }
 0x1eb   : > { %v1371_v6 = vadd.f32 %v1370_v15, %v4156_v17  ;;  %v1372_v33 = vpop.f32.mrb[58].mxu0  ;;  %1970 = vrot.lane.b32.xlu1 %v1952_v36, %s4905_s12  ;;  %1972 = vrot.lane.b32.xlu0 %v1953_v42, %s4905_s12  ;;  %v1615_v17 = vpop.permute.xlu0 %1614 }
 0x1ec   : > { %v1373_v50 = vadd.f32 %v1372_v33, %v4158_v18  ;;  %v1374_v8 = vpop.f32.mrb[59].mxu0  ;;  %v1940_v49 = vld [vmem:[#allocation2 + $0x280] sm:$0xff] }
 0x1ed   : > { %1539 = vst.msk [vmem:[#allocation2 + $0x2b0] sm:$0xff] %vm1482_vm3, %v1371_v6  ;;  %v1375_v3 = vadd.f32 %v1374_v8, %v4160_v19  ;;  %v1955_v9 = vmul.f32 %v1947_v58, %v1940_v49  ;;  %v1956_v19 = vmul.f32 %v4213_v44, %v1363_v5  ;;  %v1558_v6 = vld [vmem:[#allocation2 + $0x190] sm:$0xff] }
 0x1ee   : > { %v1942_v16 = vld [vmem:[#allocation2 + $0x298] sm:$0xff]  ;;  %v1609_v10 = vpop.permute.xlu1 %1608 }
 0x1ef   : > { %1541 = vst.msk [vmem:[#allocation2 + $0x2c8] sm:$0xff] %vm1482_vm3, %v1375_v3  ;;  %1974 = vrot.lane.b32.xlu1 %v1954_v7, %s4905_s12  ;;  %1976 = vrot.lane.b32.xlu0 %v1955_v9, %s4905_s12  ;;  %v1623_v18 = vsel %vm1622_vm8, %v1607_v47, %v1609_v10  ;;  %v1957_v30 = vmul.f32 %v1947_v58, %v1942_v16  ;;  %v1619_v44 = vpop.permute.xlu0 %1618  ;;  %v1560_v7 = vld [vmem:[#allocation2 + $0x1a8] sm:$0xff] }
 0x1f0   : > { %v1635_v56 = vadd.f32 %v1623_v18, %v4220_v37  ;;  %v1636_v8 = vadd.f32 %v1609_v10, %v1558_v6 }
 0x1f1   : > { %v1378_v22 = vpop.f32.mrb[60].mxu0 }
 0x1f2   : > { %v1379_v11 = vadd.f32 %v1378_v22, %v4162_v20  ;;  %v1380_v60 = vpop.f32.mrb[61].mxu0  ;;  %v1613_v55 = vpop.permute.xlu1 %1612 }
 0x1f3   : > { %v1381_v52 = vadd.f32 %v1380_v60, %v4164_v23  ;;  %v1382_v34 = vpop.f32.mrb[62].mxu0  ;;  %1978 = vrot.lane.b32.xlu1 %v1956_v19, %s4905_s12  ;;  %1980 = vrot.lane.b32.xlu0 %v1957_v30, %s4905_s12  ;;  %v1624_v12 = vsel %vm1622_vm8, %v1611_v61, %v1613_v55  ;;  %v1638_v16 = vadd.f32 %v1613_v55, %v1560_v7  ;;  %v1562_v60 = vld [vmem:[#allocation2 + $0x1c0] sm:$0xff]  ;;  %s351_s12 = scalar_lea.vmem [#allocation4], %s350_s0 }
 0x1f4   : > { %v1383_v47 = vadd.f32 %v1382_v34, %v4166_v24  ;;  %v1384_v37 = vpop.f32.mrb[63].mxu0  ;;  %v1637_v57 = vadd.f32 %v1624_v12, %v4225_v45  ;;  %v2003_v58 = vld [vmem:[#allocation2 + $0x2b0] sm:$0xff] }
 0x1f5   : > { %1543 = vst.msk [vmem:[#allocation2 + $0x2e0] sm:$0xff] %vm1482_vm3, %v1381_v52  ;;  %v1385_v20 = vadd.f32 %v1384_v37, %v4168_v25  ;;  %v4335_v25 = vpop.permute.xlu0 %1737 }
 0x1f6   : > { %v1617_v5 = vpop.permute.xlu1 %1616  ;;  %v2005_v14 = vld [vmem:[#allocation2 + $0x2c8] sm:$0xff] }
 0x1f7   : > { %1545 = vst.msk [vmem:[#allocation2 + $0x2f8] sm:$0xff] %vm1482_vm3, %v1385_v20  ;;  %2018 = vrot.lane.b32.xlu1 %v1369_v43, %s3483_s18  ;;  %2020 = vrot.lane.b32.xlu0 %v2003_v58, %s3483_s18  ;;  %v1625_v23 = vsel %vm1622_vm8, %v1615_v17, %v1617_v5  ;;  %v1564_v20 = vld [vmem:[#allocation2 + $0x1d8] sm:$0xff] }
 0x1f8   : > { %v1639_v24 = vadd.f32 %v1625_v23, %v4233_v53 }
 0x1f9   : > { %v1388_v31 = vpop.f32.mrb[64].mxu0  ;;  %v1742_v9 = vpop.permute.xlu0 %1741 }
 0x1fa   : > { %v1389_v45 = vadd.f32 %v1388_v31, %v4170_v26  ;;  %v1390_v61 = vpop.f32.mrb[65].mxu0  ;;  %v1621_v36 = vpop.permute.xlu1 %1620 }
 0x1fb   : > { %v1391_v42 = vadd.f32 %v1390_v61, %v4172_v27  ;;  %v1392_v15 = vpop.f32.mrb[66].mxu0  ;;  %2022 = vrot.lane.b32.xlu1 %v1373_v50, %s3483_s18  ;;  %2024 = vrot.lane.b32.xlu0 %v2005_v14, %s3483_s18  ;;  %v1626_v43 = vsel %vm1622_vm8, %v1619_v44, %v1621_v36 }
 0x1fc   : > { %v1393_v53 = vadd.f32 %v1392_v15, %v4174_v28  ;;  %v1394_v33 = vpop.f32.mrb[67].mxu0  ;;  %v1641_v26 = vadd.f32 %v1626_v43, %v4237_v59  ;;  %v2007_v27 = vld [vmem:[#allocation2 + $0x2e0] sm:$0xff] }
 0x1fd   : > { %1547 = vst.msk [vmem:[#allocation2 + $0x310] sm:$0xff] %vm1482_vm3, %v1391_v42  ;;  %v1395_v49 = vadd.f32 %v1394_v33, %v4177_v35 }
 0x1fe   : > { %v1662_v3 = vpop.permute.xlu1 %1661  ;;  %v2009_v18 = vld [vmem:[#allocation2 + $0x2f8] sm:$0xff] }
 0x1ff   : > { %1549 = vst.msk [vmem:[#allocation2 + $0x328] sm:$0xff] %vm1482_vm3, %v1395_v49  ;;  %2026 = vrot.lane.b32.xlu1 %v1379_v11, %s3483_s18  ;;  %2028 = vrot.lane.b32.xlu0 %v2007_v27, %s3483_s18  ;;  %v1676_v28 = vsel %vm1675_vm9, %v4229_v51, %v1662_v3  ;;  %v1689_v50 = vadd.f32 %v1662_v3, %v1636_v8 }
 0x200   : > { %v1688_v59 = vadd.f32 %v1676_v28, %v1635_v56  ;;  %v2067_v56 = vsel %vm1622_vm8, %v4222_v38, %v4255_v1  ;;  %v2163_v28 = vld [vmem:[%s4875_s4] sm:$0x1f] }
 0x201   : > { %v1398_v10 = vpop.f32.mrb[68].mxu0 }
 0x202   : > { %v1399_v17 = vadd.f32 %v1398_v10, %v4181_v39  ;;  %v1400_v35 = vpop.f32.mrb[69].mxu0  ;;  %v1666_v22 = vpop.permute.xlu1 %1665 }
 0x203   : > { %v1401_v19 = vadd.f32 %v1400_v35, %v4183_v40  ;;  %v1402_v30 = vpop.f32.mrb[70].mxu0  ;;  %2030 = vrot.lane.b32.xlu1 %v1383_v47, %s3483_s18  ;;  %2032 = vrot.lane.b32.xlu0 %v2009_v18, %s3483_s18  ;;  %v1677_v51 = vsel %vm1675_vm9, %v4241_v32, %v1666_v22  ;;  %v1691_v11 = vadd.f32 %v1666_v22, %v1638_v16 }
 0x204   : > { %v1403_v39 = vadd.f32 %v1402_v30, %v4186_v41  ;;  %v1404_v55 = vpop.f32.mrb[71].mxu0  ;;  %v2056_v52 = vld [vmem:[#allocation2 + $0x310] sm:$0xff]  ;;  %v1690_v34 = vadd.f32 %v1677_v51, %v1637_v57  ;;  %v1640_v40 = vadd.f32 %v1617_v5, %v1562_v60  ;;  %v2070_v47 = vmul.f32 %v4222_v38, %v1389_v45  ;;  %v4368_v57 = vpop.permute.xlu0 %1819 }
 0x205   : > { %1551 = vst.msk [vmem:[#allocation2 + $0x340] sm:$0xff] %vm1482_vm3, %v1401_v19  ;;  %v1405_v12 = vadd.f32 %v1404_v55, %v4189_v46  ;;  %v2071_v37 = vmul.f32 %v2067_v56, %v2056_v52  ;;  %v1642_v46 = vadd.f32 %v1621_v36, %v1564_v20  ;;  %v2072_v5 = vmul.f32 %v4222_v38, %v1393_v53 }
 0x206   : > { %v2058_v32 = vld [vmem:[#allocation2 + $0x328] sm:$0xff]  ;;  %v1670_v44 = vpop.permute.xlu1 %1669  ;;  %v2074_v42 = vmul.f32 %v4222_v38, %v1399_v17 }
 0x207   : > { %1553 = vst.msk [vmem:[#allocation2 + $0x358] sm:$0xff] %vm1482_vm3, %v1405_v12  ;;  %2086 = vrot.lane.b32.xlu1 %v2070_v47, %s4906_s20  ;;  %2088 = vrot.lane.b32.xlu0 %v2071_v37, %s4906_s20  ;;  %v1678_v41 = vsel %vm1675_vm9, %v4246_v62, %v1670_v44  ;;  %v1693_v1 = vadd.f32 %v1670_v44, %v1640_v40 }
 0x208   : > { %v1692_v58 = vadd.f32 %v1678_v41, %v1639_v24  ;;  %v2073_v23 = vmul.f32 %v2067_v56, %v2058_v32  ;;  %v1746_v43 = vpop.permute.xlu0 %1745 }
 0x20a   : > { %v1674_v31 = vpop.permute.xlu1 %1673 }
 0x20b   : > { %2090 = vrot.lane.b32.xlu1 %v2072_v5, %s4906_s20  ;;  %2092 = vrot.lane.b32.xlu0 %v2073_v23, %s4906_s20  ;;  %v1679_v45 = vsel %vm1675_vm9, %v4257_v48, %v1674_v31  ;;  %v1695_v61 = vadd.f32 %v1674_v31, %v1642_v46  ;;  %v2076_v48 = vmul.f32 %v4222_v38, %v1403_v39 }
 0x20c   : > { %v2060_v14 = vld [vmem:[#allocation2 + $0x340] sm:$0xff]  ;;  %v1694_v62 = vadd.f32 %v1679_v45, %v1641_v26  ;;  %v1750_v3 = vpop.permute.xlu0 %1749 }
 0x20d   : > { %v2075_v15 = vmul.f32 %v2067_v56, %v2060_v14 }
 0x20e   : > { %v2062_v24 = vld [vmem:[#allocation2 + $0x358] sm:$0xff]  ;;  %v1740_v36 = vpop.permute.xlu1 %1739 }
 0x20f   : > { %2094 = vrot.lane.b32.xlu1 %v2074_v42, %s4906_s20  ;;  %2096 = vrot.lane.b32.xlu0 %v2075_v15, %s4906_s20  ;;  %v1754_v6 = vsel %vm1753_vm7, %v4335_v25, %v1740_v36  ;;  %v1767_v53 = vadd.f32 %v1740_v36, %v1689_v50  ;;  %v2077_v8 = vmul.f32 %v2067_v56, %v2062_v24 }
 0x210   : > { %v1766_v33 = vadd.f32 %v1754_v6, %v1688_v59  ;;  %v1838_v16 = vpop.permute.xlu0 %1837 }
 0x212   : > { %v1744_v49 = vpop.permute.xlu1 %1743 }
 0x213   : > { %2098 = vrot.lane.b32.xlu1 %v2076_v48, %s4906_s20  ;;  %2100 = vrot.lane.b32.xlu0 %v2077_v8, %s4906_s20  ;;  %v1755_v26 = vsel %vm1753_vm7, %v1742_v9, %v1744_v49  ;;  %v1769_v27 = vadd.f32 %v1744_v49, %v1691_v11 }
 0x214   : > { %v4387_v7 = vadd.f32 %v1755_v26, %v1690_v34 }
 0x216   : > { %v1748_v25 = vpop.permute.xlu1 %1747 }
 0x217   : > { %2166 = vperm.xlu1 %3289, %v2163_v28   ;;  %v1756_v38 = vsel %vm1753_vm7, %v1746_v43, %v1748_v25  ;;  %v1771_v50 = vadd.f32 %v1748_v25, %v1693_v1 }
 0x218   : > { %v1770_v59 = vadd.f32 %v1756_v38, %v1692_v58 }
 0x21a   : > { %v1752_v10 = vpop.permute.xlu1 %1751 }
 0x21b   : > { %v1757_v17 = vsel %vm1753_vm7, %v1750_v3, %v1752_v10  ;;  %v4391_v35 = vadd.f32 %v1752_v10, %v1695_v61 }
 0x21c   : > { %v1772_v9 = vadd.f32 %v1757_v17, %v1694_v62 }
 0x21e   : > { %v1822_v18 = vpop.permute.xlu0 %1821 }
 0x21f   : > { %v1844_v43 = vsel %vm1843_vm6, %v4368_v57, %v1822_v18 }
 0x220   : > { %v1860_v8 = vadd.f32 %v1844_v43, %v1766_v33 }
 0x222   : > { %v1828_v22 = vpop.permute.xlu0 %1827 }
 0x223   : > { %v1846_v26 = vsel %vm1843_vm6, %v4291_v2, %v1828_v22 }
 0x224   : > { %v1862_v17 = vadd.f32 %v1846_v26, %v4387_v7 }
 0x226   : > { %v1834_v19 = vpop.permute.xlu0 %1833 }
 0x227   : > { %v1848_v30 = vsel %vm1843_vm6, %v4303_v13, %v1834_v19  ;;  %v1824_v39 = vpop.permute.xlu1 %1823 }
 0x228   : > { %v4395_v51 = vadd.f32 %v1848_v30, %v1770_v59  ;;  %v1845_v15 = vsel %vm1843_vm6, %v1822_v18, %v1824_v39 }
 0x229   : > { %v1861_v6 = vadd.f32 %v1845_v15, %v1767_v53 }
 0x22a   : > { %v1840_v11 = vpop.permute.xlu0 %1839 }
 0x22b   : > { %v1850_v56 = vsel %vm1843_vm6, %v1838_v16, %v1840_v11  ;;  %v1830_v55 = vpop.permute.xlu1 %1829 }
 0x22c   : > { %v4398_v60 = vadd.f32 %v1850_v56, %v1772_v9  ;;  %v1847_v49 = vsel %vm1843_vm6, %v1828_v22, %v1830_v55 }
 0x22d   : > { %v1863_v16 = vadd.f32 %v1847_v49, %v1769_v27 }
 0x22f   : > { %v1836_v52 = vpop.permute.xlu1 %1835 }
 0x230   : > { %v1849_v25 = vsel %vm1843_vm6, %v1834_v19, %v1836_v52 }
 0x231   : > { %v1865_v18 = vadd.f32 %v1849_v25, %v1771_v50 }
 0x233   : > { %v1842_v34 = vpop.permute.xlu1 %1841 }
 0x234   : > { %v1851_v56 = vsel %vm1843_vm6, %v1840_v11, %v1842_v34 }
 0x240   : > { %v1900_v40 = vpop.permute.xlu0 %1899 }
 0x244   : > { %v1904_v47 = vpop.permute.xlu0 %1903 }
 0x249   : > { %v1902_v12 = vpop.permute.xlu1 %1901 }
 0x24a   : > { %v1915_v48 = vsel %vm1790_vm5, %v1900_v40, %v1902_v12  ;;  %v1928_v3 = vadd.f32 %v1902_v12, %v1861_v6 }
 0x24b   : > { %v1927_v38 = vadd.f32 %v1915_v48, %v1860_v8 }
 0x24d   : > { %v1906_v37 = vpop.permute.xlu1 %1905 }
 0x24e   : > { %v1916_v53 = vsel %vm1790_vm5, %v1904_v47, %v1906_v37  ;;  %v1930_v30 = vadd.f32 %v1906_v37, %v1863_v16 }
 0x24f   : > { %v1929_v19 = vadd.f32 %v1916_v53, %v1862_v17 }
 0x251   : > { %v1908_v32 = vpop.permute.xlu1 %1907  ;;  %v1910_v44 = vpop.permute.xlu0 %1909 }
 0x252   : > { %v1917_v39 = vsel %vm1790_vm5, %v1908_v32, %v1910_v44 }
 0x253   : > { %v1931_v34 = vadd.f32 %v1917_v39, %v4395_v51 }
 0x255   : > { %v1912_v41 = vpop.permute.xlu1 %1911  ;;  %v4400_v1 = vpop.permute.xlu0 %1913 }
 0x256   : > { %v1918_v32 = vsel %vm1790_vm5, %v1912_v41, %v4400_v1 }
 0x257   : > { %v1933_v48 = vadd.f32 %v1918_v32, %v4398_v60 }
 0x259   : > { %v1967_v13 = vpop.permute.xlu1 %1966  ;;  %v1969_v20 = vpop.permute.xlu0 %1968 }
 0x25a   : > { %v1982_v28 = vsel %vm1717_vm4, %v1967_v13, %v1969_v20  ;;  %v1995_v10 = vadd.f32 %v1969_v20, %v1928_v3  ;;  %v1932_v13 = vadd.f32 %v1910_v44, %v1865_v18  ;;  %v1867_v20 = vadd.f32 %v1851_v56, %v4391_v35 }
 0x25b   : > { %v1994_v9 = vadd.f32 %v1982_v28, %v1927_v38 }
 0x25c   : > { %v1934_v35 = vadd.f32 %v4400_v1, %v1867_v20 }
 0x25d   : > { %v1971_v58 = vpop.permute.xlu1 %1970  ;;  %v1973_v46 = vpop.permute.xlu0 %1972 }
 0x25e   : > { %v1983_v2 = vsel %vm1717_vm4, %v1971_v58, %v1973_v46  ;;  %v1997_v40 = vadd.f32 %v1973_v46, %v1930_v30 }
 0x25f   : > { %v1996_v50 = vadd.f32 %v1983_v2, %v1929_v19 }
 0x261   : > { %v1975_v5 = vpop.permute.xlu1 %1974  ;;  %v1977_v23 = vpop.permute.xlu0 %1976 }
 0x262   : > { %v1984_v58 = vsel %vm1717_vm4, %v1975_v5, %v1977_v23 }
 0x263   : > { %v1998_v5 = vadd.f32 %v1984_v58, %v1931_v34 }
 0x265   : > { %v4402_v31 = vpop.permute.xlu1 %1978  ;;  %v4404_v45 = vpop.permute.xlu0 %1980 }
 0x266   : > { %v1985_v41 = vsel %vm1717_vm4, %v4402_v31, %v4404_v45  ;;  %v2001_v8 = vadd.f32 %v4404_v45, %v1934_v35 }
 0x267   : > { %v2000_v16 = vadd.f32 %v1985_v41, %v1933_v48 }
 0x269   : > { %v2019_v61 = vpop.permute.xlu1 %2018  ;;  %v2021_v14 = vpop.permute.xlu0 %2020 }
 0x26a   : > { %v2035_v33 = vsel %vm2034_vm10, %v2019_v61, %v2021_v14  ;;  %v2048_v22 = vadd.f32 %v2021_v14, %v1995_v10  ;;  %v1999_v61 = vadd.f32 %v1977_v23, %v1932_v13 }
 0x26b   : > { %v2047_v55 = vadd.f32 %v2035_v33, %v1994_v9 }
 0x26d   : > { %v2023_v62 = vpop.permute.xlu1 %2022  ;;  %v2025_v42 = vpop.permute.xlu0 %2024 }
 0x26e   : > { %v2036_v12 = vsel %vm2034_vm10, %v2023_v62, %v2025_v42  ;;  %v2050_v11 = vadd.f32 %v2025_v42, %v1997_v40 }
 0x26f   : > { %v2049_v46 = vadd.f32 %v2036_v12, %v1996_v50  ;;  %v2162_v12 = vld [vmem:[%s4874_s3] sm:$0x1f] }
 0x271   : > { %v2027_v24 = vpop.permute.xlu1 %2026  ;;  %v2029_v36 = vpop.permute.xlu0 %2028 }
 0x272   : > { %v2037_v15 = vsel %vm2034_vm10, %v2027_v24, %v2029_v36  ;;  %v2052_v23 = vadd.f32 %v2029_v36, %v1999_v61 }
 0x273   : > { %v2051_v49 = vadd.f32 %v2037_v15, %v1998_v5 }
 0x275   : > { %v2031_v59 = vpop.permute.xlu1 %2030  ;;  %v2033_v57 = vpop.permute.xlu0 %2032 }
 0x276   : > { %v2038_v26 = vsel %vm2034_vm10, %v2031_v59, %v2033_v57  ;;  %v2054_v10 = vadd.f32 %v2033_v57, %v2001_v8 }
 0x277   : > { %v2053_v17 = vadd.f32 %v2038_v26, %v2000_v16 }
 0x279   : > { %v2087_v27 = vpop.permute.xlu1 %2086  ;;  %v2089_v52 = vpop.permute.xlu0 %2088 }
 0x27a   : > { %v2102_v47 = vsel %vm1586_vm1, %v2087_v27, %v2089_v52  ;;  %v2115_v7 = vadd.f32 %v2089_v52, %v2048_v22 }
 0x27b   : > { %v2114_v37 = vadd.f32 %v2102_v47, %v2047_v55 }
 0x27c   : > { %v2147_v44 = vadd.f32 %v4270_v29, %v2115_v7 }
 0x27d   : > { %v2091_v14 = vpop.permute.xlu1 %2090  ;;  %v2093_v62 = vpop.permute.xlu0 %2092  ;;  %v2146_v42 = vadd.f32 %v4270_v29, %v2114_v37 }
 0x27e   : > { %v2103_v43 = vsel %vm1586_vm1, %v2091_v14, %v2093_v62  ;;  %v2117_v6 = vadd.f32 %v2093_v62, %v2050_v11  ;;  %v2155_v29 = vmax.f32 %v2147_v44, 0.0 }
 0x27f   : > { %v2116_v51 = vadd.f32 %v2103_v43, %v2049_v46  ;;  %v2154_v53 = vmax.f32 %v2146_v42, 0.0 }
 0x280   : > { %v2149_v24 = vadd.f32 %v4267_v4, %v2117_v6 }
 0x281   : > { %v2148_v1 = vadd.f32 %v4267_v4, %v2116_v51  ;;  %v2095_v3 = vpop.permute.xlu1 %2094  ;;  %v2097_v28 = vpop.permute.xlu0 %2096 }
 0x282   : > { %v2157_v25 = vmax.f32 %v2149_v24, 0.0  ;;  %v2104_v60 = vsel %vm1586_vm1, %v2095_v3, %v2097_v28  ;;  %v2119_v38 = vadd.f32 %v2097_v28, %v2052_v23 }
 0x283   : > { %v2156_v31 = vmax.f32 %v2148_v1, 0.0  ;;  %v2118_v36 = vadd.f32 %v2104_v60, %v2051_v49 }
 0x284   : > { %v2999_v33 = vpack.c.bf16 %v2157_v25, %v2155_v29  ;;  %v2151_v59 = vadd.f32 %v4277_v63, %v2119_v38 }
 0x285   : > { %v3001_v45 = vpack.c.bf16 %v2156_v31, %v2154_v53  ;;  %v2099_v9 = vpop.permute.xlu1 %2098  ;;  %v2101_v18 = vpop.permute.xlu0 %2100  ;;  %v2150_v2 = vadd.f32 %v4277_v63, %v2118_v36 }
 0x286   : > { %v2105_v4 = vsel %vm1586_vm1, %v2099_v9, %v2101_v18  ;;  %v2121_v30 = vadd.f32 %v2101_v18, %v2054_v10  ;;  %3000 = vmatprep.subr.bf16.mxu1 %v2999_v33  ;;  %v2159_v57 = vmax.f32 %v2151_v59, 0.0  ;;  %v2317_v33 = vld [vmem:[%s4877_s6 + $0x8] sm:$0xff]  ;;  %v2327_v59 = vld [vmem:[%s4877_s6 + $0x58] sm:$0xff]  ;;  %vm3487_vm1 = vmmov 0  }
 0x287   : > { %v2120_v22 = vadd.f32 %v2105_v4, %v2053_v17  ;;  %3002 = vmatpush1.bf16.msra.mxu1 %v3001_v45  ;;  %v2158_v55 = vmax.f32 %v2150_v2, 0.0  ;;  %v2322_v17 = vld [vmem:[%s4877_s6 + $0x30] sm:$0xff]  ;;  %v2316_v45 = vld [vmem:[%s4877_s6] sm:$0xff]  ;;  %v2321_v18 = vld [vmem:[%s4877_s6 + $0x28] sm:$0xff] }
 0x288   : > { %v2153_v56 = vadd.f32 %v4279_v0, %v2121_v30  ;;  %v3007_v9 = vpack.c.bf16 %v2322_v17, %v2317_v33  ;;  %v2332_v4 = vld [vmem:[%s4877_s6 + $0x80] sm:$0xff]  ;;  %v3009_v30 = vpack.c.bf16 %v2321_v18, %v2316_v45 }
 0x289   : > { %v2152_v19 = vadd.f32 %v4279_v0, %v2120_v22  ;;  %v3011_v2 = vpack.c.bf16 %v2332_v4, %v2327_v59  ;;  %v2326_v22 = vld [vmem:[%s4877_s6 + $0x50] sm:$0xff]  ;;  %v2323_v4 = vld [vmem:[%s4877_s6 + $0x38] sm:$0xff] }
 0x28a   : > { %v2161_v39 = vmax.f32 %v2153_v56, 0.0  ;;  %v2331_v56 = vld [vmem:[%s4877_s6 + $0x78] sm:$0xff]  ;;  %v2318_v59 = vld [vmem:[%s4877_s6 + $0x10] sm:$0xff] }
 0x28b   : > { %v2160_v27 = vmax.f32 %v2152_v19, 0.0  ;;  %v2337_v19 = vld [vmem:[%s4877_s6 + $0xa8] sm:$0xff] }
 0x28c   : > { %v3003_v52 = vpack.c.bf16 %v2161_v39, %v2159_v57  ;;  %v2342_v57 = vld [vmem:[%s4877_s6 + $0xd0] sm:$0xff]  ;;  %v3013_v39 = vpack.c.bf16 %v2331_v56, %v2326_v22 }
 0x28d   : > { %v3005_v40 = vpack.c.bf16 %v2160_v27, %v2158_v55  ;;  %v3015_v55 = vpack.c.bf16 %v2342_v57, %v2337_v19  ;;  %v2336_v27 = vld [vmem:[%s4877_s6 + $0xa0] sm:$0xff]  ;;  %v2334_v22 = vld [vmem:[%s4877_s6 + $0x90] sm:$0xff] }
 0x28e   : > { %3004 = vmatprep.subr.bf16.mxu1 %v3003_v52  ;;  %v2341_v52 = vld [vmem:[%s4877_s6 + $0xc8] sm:$0xff] }
 0x28f   : > { %3006 = vmatpush1.bf16.msra.mxu1 %v3005_v40  ;;  %v2347_v40 = vld [vmem:[%s4877_s6 + $0xf8] sm:$0xff] }
 0x290   : > { %3008 = vmatprep.subr.bf16.mxu1 %v3007_v9 }
 0x292   : > { %2939 = vmatmul.mubr.msk.f32.vlgmr.msra.gmra.mrb[36].mxu1 %vm2169_vm11, %v2162_v12  ;;  %v2352_v12 = vld [vmem:[%s4877_s6 + $0x120] sm:$0xff] }
 0x293   : > { %3010 = vmatpush1.bf16.msra.mxu1 %v3009_v30 }
 0x294   : > { %3012 = vmatprep.subr.bf16.mxu1 %v3011_v2  ;;  %v2329_v2 = vld [vmem:[%s4877_s6 + $0x68] sm:$0xff] }
 0x296   : > { %v2167_v63 = vpop.permute.xlu1 %2166 }
 0x297   : > { %3014 = vmatpush1.bf16.msra.mxu1 %v3013_v39  ;;  %v3045_v39 = vpack.c.bf16 %v2323_v4, %v2318_v59  ;;  %v2335_v59 = vld [vmem:[%s4877_s6 + $0x98] sm:$0xff] }
 0x298   : > { %3016 = vmatprep.subr.bf16.mxu1 %v3015_v55 }
 0x365   : > { %v2239_v47 = vpop.f32.mrb[36].mxu1 }
 0x366   : > { %v2240_v0 = vadd.f32 %v2239_v47, %v2167_v63  ;;  %v2241_v7 = vpop.f32.mrb[37].mxu1  ;;  %v3017_v47 = vpack.c.bf16 %v2341_v52, %v2336_v27  ;;  %v3047_v27 = vpack.c.bf16 %v2334_v22, %v2329_v2  ;;  %v2328_v52 = vld [vmem:[%s4877_s6 + $0x60] sm:$0xff]  ;;  %v2345_v2 = vld [vmem:[%s4877_s6 + $0xe8] sm:$0xff] }
 0x367   : > { %v2242_v13 = vadd.f32 %v2241_v7, %v2167_v63  ;;  %v3019_v7 = vpack.c.bf16 %v2352_v12, %v2347_v40  ;;  %v2333_v40 = vld [vmem:[%s4877_s6 + $0x88] sm:$0xff]  ;;  %v2344_v12 = vld [vmem:[%s4877_s6 + $0xe0] sm:$0xff] }
 0x368   : > { %v2245_v50 = vsel %vm2244_vm13, %v2240_v0, -inf  ;;  %3018 = vmatpush1.bf16.msra.mxu1 %v3017_v47 }
 0x369   : > { %v2246_v37 = vrot.slane %v2245_v50, 4  ;;  %v2253_v20 = vsel %vm2252_vm14, %v2242_v13, -inf  ;;  %3020 = vmatprep.subr.bf16.mxu1 %v3019_v7  ;;  %v2343_v7 = vld [vmem:[%s4877_s6 + $0xd8] sm:$0xff] }
 0x36a   : > { %v2254_v58 = vrot.slane %v2253_v20, 4 }
 0x36b   : > { %v2247_v11 = vmax.f32 %v2245_v50, %v2246_v37  ;;  %v2351_v50 = vld [vmem:[%s4877_s6 + $0x118] sm:$0xff]  ;;  %v2357_v37 = vld [vmem:[%s4877_s6 + $0x148] sm:$0xff] }
 0x36c   : > { %v2255_v34 = vmax.f32 %v2253_v20, %v2254_v58  ;;  %v2362_v20 = vld [vmem:[%s4877_s6 + $0x170] sm:$0xff] }
 0x36d   : > { %v2248_v32 = vrot.slane %v2247_v11, 2 }
 0x36e   : > { %v2256_v61 = vrot.slane %v2255_v34, 2 }
 0x36f   : > { %v2249_v46 = vmax.f32 %v2247_v11, %v2248_v32  ;;  %v3023_v11 = vpack.c.bf16 %v2362_v20, %v2357_v37  ;;  %v2361_v32 = vld [vmem:[%s4877_s6 + $0x168] sm:$0xff] }
 0x370   : > { %v2257_v14 = vmax.f32 %v2255_v34, %v2256_v61  ;;  %v2356_v34 = vld [vmem:[%s4877_s6 + $0x140] sm:$0xff]  ;;  %v2367_v61 = vld [vmem:[%s4877_s6 + $0x198] sm:$0xff] }
 0x371   : > { %v2250_v62 = vrot.slane %v2249_v46, 1 }
 0x372   : > { %v2258_v15 = vrot.slane %v2257_v14, 1 }
 0x373   : > { %v2251_v44 = vmax.f32 %v2249_v46, %v2250_v62  ;;  %v2372_v46 = vld [vmem:[%s4877_s6 + $0x1c0] sm:$0xff] }
 0x374   : > { %v2259_v43 = vmax.f32 %v2257_v14, %v2258_v15  ;;  %v3025_v14 = vpack.c.bf16 %v2361_v32, %v2356_v34  ;;  %v3027_v62 = vpack.c.bf16 %v2372_v46, %v2367_v61  ;;  %v2366_v15 = vld [vmem:[%s4877_s6 + $0x190] sm:$0xff]  ;;  %v2359_v34 = vld [vmem:[%s4877_s6 + $0x158] sm:$0xff]  ;;  %v2364_v32 = vld [vmem:[%s4877_s6 + $0x180] sm:$0xff] }
 0x375   : > { %v2260_v6 = vsub.f32 %v2240_v0, %v2251_v44  ;;  %v2371_v44 = vld [vmem:[%s4877_s6 + $0x1b8] sm:$0xff]  ;;  %v3059_v46 = vpack.c.bf16 %v2364_v32, %v2359_v34  ;;  %v2699_v34 = vld [vmem:[%s4879_s8 + $0x10] sm:$0xff] }
 0x376   : > { %v2261_v35 = vsub.f32 %v2242_v13, %v2259_v43  ;;  %v2346_v13 = vld [vmem:[%s4877_s6 + $0xf0] sm:$0xff]  ;;  %v2377_v43 = vld [vmem:[%s4877_s6 + $0x1e8] sm:$0xff] }
 0x377   : > { %v2262_v5 = vmul.f32 1.442695, %v2260_v6  ;;  %v3021_v58 = vpack.c.bf16 %v2351_v50, %v2346_v13  ;;  %v2382_v6 = vld [vmem:[%s4877_s6 + $0x210] sm:$0xff]  ;;  %v2349_v13 = vld [vmem:[%s4877_s6 + $0x108] sm:$0xff] }
 0x378   : > { %v2264_v42 = vmul.f32 1.442695, %v2261_v35  ;;  %v3029_v35 = vpack.c.bf16 %v2371_v44, %v2366_v15  ;;  %v2354_v50 = vld [vmem:[%s4877_s6 + $0x130] sm:$0xff]  ;;  %v2369_v15 = vld [vmem:[%s4877_s6 + $0x1a8] sm:$0xff] }
 0x379   : > { %3398 = vpow2.f32 %v2262_v5  ;;  %3022 = vmatpush1.bf16.msra.mxu1 %v3021_v58  ;;  %v3031_v5 = vpack.c.bf16 %v2382_v6, %v2377_v43  ;;  %v3055_v20 = vpack.c.bf16 %v2354_v50, %v2349_v13  ;;  %v2348_v58 = vld [vmem:[%s4877_s6 + $0x100] sm:$0xff]  ;;  %v2374_v44 = vld [vmem:[%s4877_s6 + $0x1d0] sm:$0xff] }
 0x37a   : > { %3400 = vpow2.f32 %v2264_v42  ;;  %3024 = vmatprep.subr.bf16.mxu1 %v3023_v11  ;;  %v2376_v42 = vld [vmem:[%s4877_s6 + $0x1e0] sm:$0xff]  ;;  %v2353_v11 = vld [vmem:[%s4877_s6 + $0x128] sm:$0xff]  ;;  %v3063_v6 = vpack.c.bf16 %v2374_v44, %v2369_v15  ;;  %v2703_v15 = vld [vmem:[%s4879_s8 + $0x30] sm:$0xff] }
 0x37b   : > { %v3057_v61 = vpack.c.bf16 %v2353_v11, %v2348_v58  ;;  %v2400_v50 = vld [vmem:[%s4877_s6 + $0x2a0] sm:$0xff]  ;;  %v2698_v11 = vld [vmem:[%s4879_s8 + $0x8] sm:$0xff]  ;;  %v2704_v44 = vld [vmem:[%s4879_s8 + $0x38] sm:$0xff] }
 0x37c   : > { %v2697_v58 = vld [vmem:[%s4879_s8] sm:$0xff] }
 0x37d   : > { %3026 = vmatpush1.bf16.msra.mxu1 %v3025_v14  ;;  %v2358_v14 = vld [vmem:[%s4877_s6 + $0x150] sm:$0xff]  ;;  %v3107_v32 = vpack.c.bf16 %v2698_v11, %v2697_v58 }
 0x37e   : > { %3028 = vmatprep.subr.bf16.mxu1 %v3027_v62  ;;  %v2363_v62 = vld [vmem:[%s4877_s6 + $0x178] sm:$0xff] }
 0x37f   : > { %v3061_v43 = vpack.c.bf16 %v2363_v62, %v2358_v14  ;;  %v2702_v14 = vld [vmem:[%s4879_s8 + $0x28] sm:$0xff] }
 0x381   : > { %3030 = vmatpush1.bf16.msra.mxu1 %v3029_v35  ;;  %v2368_v35 = vld [vmem:[%s4877_s6 + $0x1a0] sm:$0xff] }
 0x382   : > { %3032 = vmatprep.subr.bf16.mxu1 %v3031_v5  ;;  %v2373_v5 = vld [vmem:[%s4877_s6 + $0x1c8] sm:$0xff] }
 0x383   : > { %v3399_v51 = vpop.eup %3398 }
 0x384   : > { %v3401_v48 = vpop.eup %3400  ;;  %v2266_v41 = vsel %vm2244_vm13, %v3399_v51, 0.0 }
 0x385   : > { %v2267_v23 = vrot.slane %v2266_v41, 4  ;;  %v2273_v24 = vsel %vm2252_vm14, %v3401_v48, 0.0 }
 0x386   : > { %v2274_v8 = vrot.slane %v2273_v24, 4 }
 0x387   : > { %v2268_v49 = vadd.f32 %v2267_v23, %v2266_v41  ;;  %v2392_v41 = vld [vmem:[%s4877_s6 + $0x260] sm:$0xff] }
 0x388   : > { %v2275_v26 = vadd.f32 %v2274_v8, %v2273_v24  ;;  %v2386_v8 = vld [vmem:[%s4877_s6 + $0x230] sm:$0xff] }
 0x389   : > { %v2269_v1 = vrot.slane %v2268_v49, 2 }
 0x38a   : > { %v2276_v3 = vrot.slane %v2275_v26, 2 }
 0x38b   : > { %v2270_v28 = vadd.f32 %v2269_v1, %v2268_v49  ;;  %v2391_v49 = vld [vmem:[%s4877_s6 + $0x258] sm:$0xff]  ;;  %v2402_v1 = vld [vmem:[%s4877_s6 + $0x2b0] sm:$0xff] }
 0x38c   : > { %v2277_v29 = vadd.f32 %v2276_v3, %v2275_v26  ;;  %v2397_v26 = vld [vmem:[%s4877_s6 + $0x288] sm:$0xff]  ;;  %v3037_v3 = vpack.c.bf16 %v2391_v49, %v2386_v8  ;;  %v2394_v49 = vld [vmem:[%s4877_s6 + $0x270] sm:$0xff] }
 0x38d   : > { %v2271_v25 = vrot.slane %v2270_v28, 1  ;;  %v2389_v8 = vld [vmem:[%s4877_s6 + $0x248] sm:$0xff] }
 0x38e   : > { %v2278_v60 = vrot.slane %v2277_v29, 1 }
 0x38f   : > { %v2272_v38 = vadd.f32 %v2271_v25, %v2270_v28  ;;  %v3039_v28 = vpack.c.bf16 %v2402_v1, %v2397_v26  ;;  %v2401_v25 = vld [vmem:[%s4877_s6 + $0x2a8] sm:$0xff]  ;;  %v3071_v1 = vpack.c.bf16 %v2394_v49, %v2389_v8  ;;  %v2711_v8 = vld [vmem:[%s4879_s8 + $0x70] sm:$0xff]  ;;  %v2712_v49 = vld [vmem:[%s4879_s8 + $0x78] sm:$0xff] }
 0x390   : > { %v2279_v16 = vadd.f32 %v2278_v60, %v2277_v29  ;;  %v2396_v29 = vld [vmem:[%s4877_s6 + $0x280] sm:$0xff] }
 0x391   : > { %3402 = vrcp.f32 %v2272_v38  ;;  %v3041_v60 = vpack.c.bf16 %v2401_v25, %v2396_v29  ;;  %v2319_v38 = vld [vmem:[%s4877_s6 + $0x18] sm:$0xff]  ;;  %v2404_v25 = vld [vmem:[%s4877_s6 + $0x2c0] sm:$0xff] }
 0x392   : > { %3404 = vrcp.f32 %v2279_v16  ;;  %v2324_v16 = vld [vmem:[%s4877_s6 + $0x40] sm:$0xff]  ;;  %v2399_v29 = vld [vmem:[%s4877_s6 + $0x298] sm:$0xff] }
 0x39b   : > { %v3403_v53 = vpop.eup %3402 }
 0x39c   : > { %v3405_v31 = vpop.eup %3404  ;;  %v4455_v36 = vmul.f32 %v3403_v53, %v3399_v51  ;;  %v2381_v51 = vld [vmem:[%s4877_s6 + $0x208] sm:$0xff]  ;;  %v3043_v53 = vpack.c.bf16 %v2324_v16, %v2319_v38  ;;  %v3075_v38 = vpack.c.bf16 %v2404_v25, %v2399_v29  ;;  %v2398_v16 = vld [vmem:[%s4877_s6 + $0x290] sm:$0xff] }
 0x39d   : > { %v4457_v10 = vmul.f32 %v3405_v31, %v3401_v48  ;;  %v2387_v48 = vld [vmem:[%s4877_s6 + $0x238] sm:$0xff]  ;;  %v3033_v23 = vpack.c.bf16 %v2381_v51, %v2376_v42  ;;  %v2384_v51 = vld [vmem:[%s4877_s6 + $0x220] sm:$0xff] }
 0x39e   : > { %2286 = vst [vmem:[#allocation3] sm:$0x1f] %v4455_v36  ;;  %v3035_v24 = vpack.c.bf16 %v2392_v41, %v2387_v48  ;;  %v2379_v42 = vld [vmem:[%s4877_s6 + $0x1f8] sm:$0xff]  ;;  %v3065_v48 = vpack.c.bf16 %v2373_v5, %v2368_v35  ;;  %v2706_v35 = vld [vmem:[%s4879_s8 + $0x48] sm:$0xff] }
 0x39f   : > { %2287 = vst.msk [vmem:[#allocation3 + $0x8] sm:$0x1f] %vm2252_vm14, %v4457_v10  ;;  %3034 = vmatpush1.bf16.msra.mxu1 %v3033_v23  ;;  %v3067_v41 = vpack.c.bf16 %v2384_v51, %v2379_v42  ;;  %v2378_v23 = vld [vmem:[%s4877_s6 + $0x1f0] sm:$0xff]  ;;  %v2708_v51 = vld [vmem:[%s4879_s8 + $0x58] sm:$0xff] }
 0x3a0   : > { %3036 = vmatprep.subr.bf16.mxu1 %v3035_v24  ;;  %v2383_v24 = vld [vmem:[%s4877_s6 + $0x218] sm:$0xff]  ;;  %v2707_v42 = vld [vmem:[%s4879_s8 + $0x50] sm:$0xff] }
 0x3a1   : > { %v3069_v26 = vpack.c.bf16 %v2383_v24, %v2378_v23  ;;  %v2710_v23 = vld [vmem:[%s4879_s8 + $0x68] sm:$0xff] }
 0x3a3   : > { %3038 = vmatpush1.bf16.msra.mxu1 %v3037_v3  ;;  %v2388_v3 = vld [vmem:[%s4877_s6 + $0x240] sm:$0xff] }
 0x3a4   : > { %3040 = vmatprep.subr.bf16.mxu1 %v3039_v28  ;;  %v2393_v28 = vld [vmem:[%s4877_s6 + $0x268] sm:$0xff] }
 0x3a5   : > { %v4504_v63 = vld [vmem:[#allocation3] sm:$0x1f] }
 0x3a6   : > { %2292 = vrot.lane.b32.xlu0 %v4504_v63, %s3484_s26  ;;  %v2289_v0 = vld [vmem:[#allocation3 + $0x8] sm:$0x1f] }
 0x3a7   : > { %2294 = vrot.lane.b32.xlu1 %v2289_v0, %s3484_s26  ;;  %3042 = vmatpush1.bf16.msra.mxu1 %v3041_v60  ;;  %s3485_s26 = smov 116   ;;  %v3073_v60 = vpack.c.bf16 %v2393_v28, %v2388_v3 }
 0x3a8   : > { %3044 = vmatprep.subr.bf16.mxu1 %v3043_v53  ;;  %v2403_v53 = vld [vmem:[%s4877_s6 + $0x2b8] sm:$0xff] }
 0x418   : > { %v2293_v31 = vpop.permute.xlu0 %2292 }
 0x419   : > { %v2295_v33 = vpop.permute.xlu1 %2294 }
 0x41a   : > { %v2297_v17 = vsel %vm2296_vm15, %v2293_v31, %v2295_v33  ;;  %v2303_v45 = vmax.f32 %v2289_v0, %v2295_v33  ;;  %v2301_v18 = vmax.f32 %v4457_v10, %v2295_v33  ;;  %v2338_v0 = vld [vmem:[%s4877_s6 + $0xb0] sm:$0xff]  ;;  %v3077_v31 = vpack.c.bf16 %v2403_v53, %v2398_v16  ;;  %v2320_v33 = vld [vmem:[%s4877_s6 + $0x20] sm:$0xff] }
 0x41b   : > { %v2302_v9 = vmax.f32 %v4504_v63, %v2297_v17  ;;  %v2300_v10 = vmax.f32 %v4455_v36, %v2297_v17  ;;  %v2339_v36 = vld [vmem:[%s4877_s6 + $0xb8] sm:$0xff]  ;;  %v3049_v63 = vpack.c.bf16 %v2333_v40, %v2328_v52  ;;  %v3053_v37 = vpack.c.bf16 %v2343_v7, %v2338_v0  ;;  %v2325_v17 = vld [vmem:[%s4877_s6 + $0x48] sm:$0xff]  ;;  %v2370_v52 = vld [vmem:[%s4877_s6 + $0x1b0] sm:$0xff] }
 0x41c   : > { %2308 = vrot.lane.b32.xlu1 %v2303_v45, %s3485_s26  ;;  %v3051_v47 = vpack.c.bf16 %v2344_v12, %v2339_v36  ;;  %v3080_v45 = vpack.c.bf16 %v2325_v17, %v2320_v33  ;;  %v2375_v40 = vld [vmem:[%s4877_s6 + $0x1d8] sm:$0xff]  ;;  %v2380_v12 = vld [vmem:[%s4877_s6 + $0x200] sm:$0xff]  ;;  %v2390_v0 = vld [vmem:[%s4877_s6 + $0x250] sm:$0xff] }
 0x41d   : > { %2306 = vrot.lane.b32.xlu0 %v2302_v9, %s3485_s26  ;;  %v3486_v9 = vmov 0.0|0.0   ;;  %v3095_v36 = vpack.c.bf16 %v2375_v40, %v2370_v52  ;;  %v2395_v7 = vld [vmem:[%s4877_s6 + $0x278] sm:$0xff]  ;;  %v2621_v16 = vld [vmem:[%s4878_s7] sm:$0x1]  ;;  %s2805_s26 = sshll.u32 %s351_s12, 4  ;;  %s4831_s26 = int_to_ptr.vmem [resolvable:$true] %s2805_s26 }
 0x41e   : > { %v3101_v13 = vpack.c.bf16 %v2395_v7, %v2390_v0  ;;  %s3410_s28 = scalar_lea.vmem %s4831_s26, 16  ;;  %p3417_p0 = scmp.lt.s32.totalorder %s4831_s26, %s3415_s27 }
 0x41f   : > { %p3411_p11 = scmp.ne.s32.totalorder %s4831_s26, %s3410_s28  ;;  %p3418_p1 = scmp.lt.s32.totalorder %s3416_s29, %s3410_s28 }
 0x421   : > { %p3412_p12 = pnand %p3411_p11, %p3583_p5  ;;  %p3419_p2 = por %p3418_p1, %p3417_p0 }
 0x423   : > { %p3413_p13 = pneg %p3412_p12 }
 0x425   : > { %p3420_p3 = pnand %p3419_p2, %p3413_p13 }
 0x48e   : > { %v2309_v30 = vpop.permute.xlu1 %2308 }
 0x48f   : > { %v4594_v56 = vmax.f32 %v2301_v18, %v2309_v30  ;;  %v2307_v19 = vpop.permute.xlu0 %2306  ;;  %v2330_v18 = vld [vmem:[%s4877_s6 + $0x70] sm:$0xff] }
 0x490   : > { %v2311_v57 = vsel %vm2310_vm0, %v2307_v19, %v2309_v30  ;;  %v3083_v4 = vpack.c.bf16 %v2335_v59, %v2330_v18  ;;  %v2340_v30 = vld [vmem:[%s4877_s6 + $0xc0] sm:$0xff] }
 0x491   : > { %v4596_v55 = vmax.f32 %v2300_v10, %v2311_v57  ;;  %2940 = vmatprep.mubr.msk.f32.mxu1 %vm1482_vm3, %v4594_v56  ;;  %v3086_v22 = vpack.c.bf16 %v2345_v2, %v2340_v30  ;;  %v2350_v10 = vld [vmem:[%s4877_s6 + $0x110] sm:$0xff]  ;;  %v2360_v57 = vld [vmem:[%s4877_s6 + $0x160] sm:$0xff] }
 0x493   : > { %2474 = vmatmul.mubr.f32.vlgmr.msra.gmra.mrb[38].mxu1 %v4596_v55 }
 0x494   : > { %3046 = vmatpush1.bf16.msra.mxu1 %v3045_v39  ;;  %2941 = vmatprep.mubr.msk.f32.mxu1 %vm1482_vm3, %v4594_v56  ;;  %v2365_v39 = vld [vmem:[%s4877_s6 + $0x188] sm:$0xff] }
 0x495   : > { %3048 = vmatprep.subr.bf16.mxu1 %v3047_v27  ;;  %v3092_v27 = vpack.c.bf16 %v2365_v39, %v2360_v57 }
 0x498   : > { %3050 = vmatpush1.bf16.msra.mxu1 %v3049_v63  ;;  %v2385_v63 = vld [vmem:[%s4877_s6 + $0x228] sm:$0xff] }
 0x499   : > { %3052 = vmatprep.subr.bf16.mxu1 %v3051_v47  ;;  %v3098_v47 = vpack.c.bf16 %v2385_v63, %v2380_v12 }
 0x49c   : > { %3054 = vmatpush1.bf16.msra.mxu1 %v3053_v37  ;;  %v2405_v37 = vld [vmem:[%s4877_s6 + $0x2c8] sm:$0xff] }
 0x49d   : > { %3056 = vmatprep.subr.bf16.mxu1 %v3055_v20  ;;  %v3104_v20 = vpack.c.bf16 %v2405_v37, %v2400_v50 }
 0x4a0   : > { %3058 = vmatpush1.bf16.msra.mxu1 %v3057_v61  ;;  %v2700_v61 = vld [vmem:[%s4879_s8 + $0x18] sm:$0xff] }
 0x4a1   : > { %3060 = vmatprep.subr.bf16.mxu1 %v3059_v46  ;;  %v3110_v46 = vpack.c.bf16 %v2700_v61, %v2699_v34 }
 0x4a4   : > { %3062 = vmatpush1.bf16.msra.mxu1 %v3061_v43  ;;  %v3116_v43 = vpack.c.bf16 %v2704_v44, %v2703_v15 }
 0x4a5   : > { %3064 = vmatprep.subr.bf16.mxu1 %v3063_v6  ;;  %v2705_v6 = vld [vmem:[%s4879_s8 + $0x40] sm:$0xff] }
 0x4a6   : > { %v3119_v5 = vpack.c.bf16 %v2706_v35, %v2705_v6 }
 0x4a8   : > { %3066 = vmatpush1.bf16.msra.mxu1 %v3065_v48  ;;  %v3122_v48 = vpack.c.bf16 %v2708_v51, %v2707_v42 }
 0x4a9   : > { %3068 = vmatprep.subr.bf16.mxu1 %v3067_v41  ;;  %v2709_v41 = vld [vmem:[%s4879_s8 + $0x60] sm:$0xff] }
 0x4aa   : > { %v3125_v24 = vpack.c.bf16 %v2710_v23, %v2709_v41 }
 0x4ac   : > { %3070 = vmatpush1.bf16.msra.mxu1 %v3069_v26  ;;  %v3128_v26 = vpack.c.bf16 %v2712_v49, %v2711_v8 }
 0x4ad   : > { %3072 = vmatprep.subr.bf16.mxu1 %v3071_v1  ;;  %v3488_v1 = vmov 1966171168  }
 0x4ae   : > { %v2625_v3 = vunpack.c.l.s4 %v3488_v1 }
 0x4b0   : > { %3074 = vmatpush1.bf16.msra.mxu1 %v3073_v60  ;;  %v2626_v28 = vunpack.c.0.s8 %v2625_v3 }
 0x4b1   : > { %3076 = vmatprep.subr.bf16.mxu1 %v3075_v38 }
 0x4b2   : > { %v2629_v29 = vsub.s32 %v2626_v28, %v3725_v21 }
 0x4b4   : > { %3078 = vmatpush1.bf16.msra.mxu1 %v3077_v31 }
 0x4b5   : > { %3079 = vmatprep.subr.bf16.mxu1 %v3486_v9 }
 0x4b7   : > { %2545 = vmatmul.mubr.f32.vlgmr.msra.gmra.mrb[40].mxu1 %v4596_v55 }
 0x4b8   : > { %3081 = vmatpush1.bf16.msra.mxu1 %v3080_v45  ;;  %2942 = vmatprep.mubr.msk.f32.mxu1 %vm1482_vm3, %v4594_v56  ;;  %v2355_v56 = vld [vmem:[%s4877_s6 + $0x138] sm:$0xff] }
 0x4b9   : > { %3082 = vmatprep.subr.bf16.mxu1 %v3486_v9  ;;  %v3089_v19 = vpack.c.bf16 %v2355_v56, %v2350_v10 }
 0x4bc   : > { %3084 = vmatpush1.bf16.msra.mxu1 %v3083_v4 }
 0x4bd   : > { %3085 = vmatprep.subr.bf16.mxu1 %v3486_v9 }
 0x4c0   : > { %3087 = vmatpush1.bf16.msra.mxu1 %v3086_v22 }
 0x4c1   : > { %3088 = vmatprep.subr.bf16.mxu1 %v3486_v9 }
 0x4c4   : > { %3090 = vmatpush1.bf16.msra.mxu1 %v3089_v19 }
 0x4c5   : > { %3091 = vmatprep.subr.bf16.mxu1 %v3486_v9 }
 0x4c8   : > { %3093 = vmatpush1.bf16.msra.mxu1 %v3092_v27 }
 0x4c9   : > { %3094 = vmatprep.subr.bf16.mxu1 %v3486_v9 }
 0x4cc   : > { %3096 = vmatpush1.bf16.msra.mxu1 %v3095_v36  ;;  %v2713_v36 = vld [vmem:[%s4880_s9] sm:$0x1] }
 0x4cd   : > { %3097 = vmatprep.subr.bf16.mxu1 %v3486_v9 }
 0x4d0   : > { %3099 = vmatpush1.bf16.msra.mxu1 %v3098_v47 }
 0x4d1   : > { %3100 = vmatprep.subr.bf16.mxu1 %v3486_v9 }
 0x4d4   : > { %3102 = vmatpush1.bf16.msra.mxu1 %v3101_v13 }
 0x4d5   : > { %3103 = vmatprep.subr.bf16.mxu1 %v3486_v9 }
 0x4d8   : > { %3105 = vmatpush1.bf16.msra.mxu1 %v3104_v20 }
 0x4d9   : > { %3106 = vmatprep.subr.bf16.mxu1 %v3486_v9 }
 0x4db   : > { %2616 = vmatmul.mubr.f32.vlgmr.msra.gmra.mrb[42].mxu1 %v4596_v55  ;;  %v2701_v55 = vld [vmem:[%s4879_s8 + $0x20] sm:$0xff] }
 0x4dc   : > { %3108 = vmatpush3.bf16.msra.mxu1 %v3107_v32  ;;  %v3113_v62 = vpack.c.bf16 %v2702_v14, %v2701_v55  ;;  %2996 = vmatprep.mubr.msk.f32.mxu1 %vm3487_vm1, %v3478_v54 }
 0x4dd   : > { %3109 = vmatprep.subr.bf16.mxu1 %v3486_v9 }
 0x4e0   : > { %3111 = vmatpush3.bf16.msra.mxu1 %v3110_v46 }
 0x4e1   : > { %3112 = vmatprep.subr.bf16.mxu1 %v3486_v9 }
 0x4e4   : > { %3114 = vmatpush3.bf16.msra.mxu1 %v3113_v62 }
 0x4e5   : > { %3115 = vmatprep.subr.bf16.mxu1 %v3486_v9 }
 0x4e8   : > { %3117 = vmatpush3.bf16.msra.mxu1 %v3116_v43 }
 0x4e9   : > { %3118 = vmatprep.subr.bf16.mxu1 %v3486_v9 }
 0x4ec   : > { %3120 = vmatpush3.bf16.msra.mxu1 %v3119_v5 }
 0x4ed   : > { %3121 = vmatprep.subr.bf16.mxu1 %v3486_v9 }
 0x4f0   : > { %3123 = vmatpush3.bf16.msra.mxu1 %v3122_v48 }
 0x4f1   : > { %3124 = vmatprep.subr.bf16.mxu1 %v3486_v9 }
 0x4f4   : > { %3126 = vmatpush3.bf16.msra.mxu1 %v3125_v24 }
 0x4f5   : > { %3127 = vmatprep.subr.bf16.mxu1 %v3486_v9 }
 0x4f8   : > { %3129 = vmatpush3.bf16.msra.mxu1 %v3128_v26 }
 0x566   : > { %v2475_v25 = vpop.f32.mrb[38].mxu1 }
 0x567   : > { %v2477_v60 = vpop.f32.mrb[39].mxu1  ;;  %v2622_v31 = vadd.f32 %v2621_v16, %v2475_v25 }
 0x568   : > { %v2630_v38 = vrot.slane %v2477_v60, %v2629_v29 }
 0x56a   : > { %v2631_v53 = vcombine.high %v2630_v38, %v2630_v38 }
 0x56c   : > { %v2638_v33 = vrot.slane %v2631_v53, %v2629_v29 }
 0x56e   : > { %v2640_v17 = vadd.f32 %v2638_v33, %v2622_v31 }
 0x58a   : > { %v2546_v45 = vpop.f32.mrb[40].mxu1 }
 0x58b   : > { %v2648_v9 = vrot.slane %v2546_v45, %v2629_v29  ;;  %v2548_v18 = vpop.f32.mrb[41].mxu1 }
 0x58c   : > { %v2666_v54 = vrot.slane %v2548_v18, %v2629_v29 }
 0x58d   : > { %v2655_v59 = vrot.slane %v2648_v9, %v2629_v29 }
 0x58e   : > { %v2667_v4 = vcombine.high %v2666_v54, %v2666_v54 }
 0x58f   : > { %v2656_v30 = vcombine.high %v2655_v59, %v2655_v59 }
 0x590   : > { %v2674_v2 = vrot.slane %v2667_v4, %v2629_v29 }
 0x591   : > { %v2658_v21 = vadd.f32 %v2656_v30, %v2640_v17 }
 0x592   : > { %v2675_v22 = vcombine.high %v2674_v2, %v2674_v2 }
 0x594   : > { %v2677_v10 = vadd.f32 %v2675_v22, %v2658_v21 }
 0x5ae   : > { %v2617_v56 = vpop.f32.mrb[42].mxu1 }
 0x5af   : > { %v2679_v19 = vcombine.high %v2617_v56, %v2617_v56  ;;  %v2619_v57 = vpop.f32.mrb[43].mxu1 }
 0x5b1   : > { %v2686_v39 = vrot.slane %v2679_v19, %v2629_v29 }
 0x5b3   : > { %v2693_v27 = vrot.slane %v2686_v39, %v2629_v29 }
 0x5b5   : > { %v2695_v52 = vadd.f32 %v2693_v27, %v2677_v10 }
 0x5b7   : > { %v2696_v40 = vmax.f32 %v2695_v52, 0.0 }
 0x5b9   : > { %2997 = vmatmul.mubr.f32.vlgmr.msra.gmra.mrb[44].mxu1 %v2696_v40 }
 0x68c   : > { %v2780_v12 = vpop.f32.mrb[44].mxu1 }
 0x68d   : > { %v2781_v63 = vadd.f32 %v2780_v12, %v2713_v36  ;;  %v2998_v47 = vpop.f32.mrb[45].mxu1 }
 0x68f   : > { %v2784_v0 = vsub.f32 0.0, %v2781_v63 }
 0x691   : > { %v2785_v7 = vmul.f32 1.442695, %v2784_v0 }
 0x693   : > { %3406 = vpow2.f32 %v2785_v7 }
 0x69d   : > { %v3407_v13 = vpop.eup %3406 }
 0x69e   : > { %v2787_v50 = vadd.f32 1.0, %v3407_v13 }
 0x6a0   : > { %3408 = vrcp.f32 %v2787_v50 }
 0x6aa   : > { %v3409_v37 = vpop.eup %3408 }
 0x6ab   : > { %2791 = vst.msk [vmem:[%s351_s12] sm:$0x1] %vm2790_vm2, %v3409_v37 }
 0x6ac   : > { %3423 = shalt.err (!%p3420_p3)
}
 0x6ad   : > { %s3424_s11 = scalar_lea.hbm %s4829_s21, 16  ;;  %s3428_s12 = scalar_lea.hbm %s4881_s10, 32 }
 0x6ae   : > { %p3425_p4 = scmp.ne.s32.totalorder %s4829_s21, %s3424_s11  ;;  %p3429_p9 = scmp.lt.u32.totalorder %s4829_s21, %s4881_s10 }
 0x6af   : > { %p3430_p10 = scmp.lt.u32.totalorder %s3428_s12, %s3424_s11  ;;  %p3432_p12 = scmp.lt.u32.totalorder %s3424_s11, %s4829_s21 }
 0x6b0   : > { %p3426_p7 = pnand %p3425_p4, %p3583_p5 }
 0x6b1   : > { %p3431_p11 = por %p3430_p10, %p3429_p9 }
 0x6b2   : > { %p3427_p8 = pneg %p3426_p7 }
 0x6b3   : > { %p3433_p13 = por %p3432_p12, %p3431_p11 }
 0x6b5   : > { %p3434_p0 = pnand %p3433_p13, %p3427_p8 }
 0x6b7   : > { %3437 = shalt.err (!%p3434_p0)
}
 0x6b8   : > { %3234 = dma.vmem_to_hbm [thread:$0]  (%p3583_p5), %s4831_s26, 16, %s4829_s21, %s2793_s30  }
 0x6b9 PF: > { %p3240_p1 = scmp.ge.s32.totalorder %s3472_s16, 2  ;;  %s2817_s28 = sand.u32 1, %s3460_s13  }
 0x6ba   : > { %s2818_s17 = scalar_lea.sflag [#allocation5], %s2817_s28 }
 0x6bb   : > { %p3237_p2 = pnand %p3240_p1, %p3587_p6 }
 0x6bd   : > { %3455 = dma.done.wait (!%p3237_p2), %s2818_s17, 16  }
 0x6be   : > { %3457 = vsyncadd (!%p3237_p2), %s2818_s17, 4294967280  ;;  %p20_p3 = scmp.ge.s32.totalorder %s3570_s19, 4   ;;  %s4907_s13 = smov %s3464_s14 }
 0x6bf   : > { %s4908_s14 = smov %s3468_s15  ;;  %s4909_s15 = smov %s3581_s22 }
 0x6c0   : > { %s4910_s16 = smov %s3570_s19  ;;  %22 = sbr.rel (!%p20_p3) target bundleno = 5 (0x5), region = 96 }
 0x6c7   :  { %2822 = vsyncpa [#allocation5], 1 }
 0x6c8   :  { %2824 = vsyncpa [#allocation5 + $0x1], 1 }

</bundles_post_ra>
